<compile_context>
chip_gen: v6e
topology: v6e:2x2x1
jax: 0.10.0
libtpu: 0.0.40
codegen_flags: <defaults>
</compile_context>

<pallas_src>
import functools

import jax
import jax.numpy as jnp
from jax.experimental import pallas as pl
from jax.experimental.pallas import tpu as pltpu

# --- small synthetic ViT config (shapes consistent with encode_image) ---
PATCH = 8          # patch size (CLIP ViT-L/14 uses 14)
WIDTH = 128        # transformer width (CLIP: 1024)
HEADS = 2          # attention heads (CLIP: 16)
HEAD_DIM = WIDTH // HEADS
LAYERS = 2         # transformer depth (CLIP: 24)
MLP_DIM = 4 * WIDTH
OUT_DIM = 128      # visual projection dim (CLIP: 768)
LN_EPS = 1e-5

_VMEM_LIMIT = 32 * 1024 * 1024   # safe on v5e/v6e (128 MiB) and v7x (64 MiB physical)


# ---------------- in-kernel helpers ----------------

def _layernorm(x, g, b):
    mu = jnp.mean(x, axis=-1, keepdims=True)
    xc = x - mu
    var = jnp.mean(xc * xc, axis=-1, keepdims=True)
    return xc * jax.lax.rsqrt(var + LN_EPS) * g + b


# ---------------- the fused ViT kernel ----------------

def _vit_kernel(bp, t_pad,
                patch_ref, kmask_ref, conv_w, stem_bias, lnp_g, lnp_b,
                ln1_g, ln1_b, w_qkv, b_qkv, w_out, b_out,
                ln2_g, ln2_b, w_fc, b_fc, w_pr, b_pr, x_ref):
    """One grid step = (bp images) x (one transformer layer), all math in VMEM.

    The activation block x_ref [bp*t_pad, WIDTH] has a layer-invariant output index map,
    so it stays resident across the whole layer loop; l == 0 additionally runs the stem.
    """
    bf16 = jnp.bfloat16
    l = pl.program_id(1)

    # ---- stem: patch-embed matmul + (cls,pos) bias + ln_pre, only at the first layer ----
    @pl.when(l == 0)
    def _stem():
        tok = jnp.dot(patch_ref[...], conv_w[...],
                      preferred_element_type=jnp.float32)           # [M, WIDTH]
        x_ref[...] = _layernorm(tok + stem_bias[...], lnp_g[...], lnp_b[...])

    x = x_ref[...]                                                   # [M, WIDTH] f32, resident

    # ---- x = x + attn(ln_1(x)) ----
    h = _layernorm(x, ln1_g[0], ln1_b[0]).astype(bf16)               # single bf16 cast
    qkv = (jnp.dot(h, w_qkv[0], preferred_element_type=jnp.float32)
           + b_qkv[0]).astype(bf16)                                  # [M, 3W]; 1/sqrt(d) pre-folded into Q

    kmask = kmask_ref[...]                                           # [1, t_pad]: 0 real / -1e30 pad
    img_out = []
    for i in range(bp):                                              # static unroll over images
        r0 = i * t_pad
        head_out = []
        for hh in range(HEADS):                                      # static unroll over heads
            q = qkv[r0:r0 + t_pad, hh * HEAD_DIM:(hh + 1) * HEAD_DIM]
            k = qkv[r0:r0 + t_pad, WIDTH + hh * HEAD_DIM:WIDTH + (hh + 1) * HEAD_DIM]
            v = qkv[r0:r0 + t_pad, 2 * WIDTH + hh * HEAD_DIM:2 * WIDTH + (hh + 1) * HEAD_DIM]
            # q @ k^T without materializing a transpose: contract last dims, bf16 in / f32 acc.
            s = jax.lax.dot_general(q, k, (((1,), (1,)), ((), ())),
                                    preferred_element_type=jnp.float32)   # [t_pad, t_pad]
            s = s + kmask                                            # mask padded key tokens
            s = s - jnp.max(s, axis=-1, keepdims=True)
            p = jnp.exp(s)
            p = p / jnp.sum(p, axis=-1, keepdims=True)               # exact divide (correctness note)
            head_out.append(jnp.dot(p.astype(bf16), v,
                                    preferred_element_type=jnp.float32))  # [t_pad, HEAD_DIM]
        img_out.append(jnp.concatenate(head_out, axis=-1))           # [t_pad, WIDTH] lane-dense
    attn = jnp.concatenate(img_out, axis=0).astype(bf16)             # [M, WIDTH]
    attn = jnp.dot(attn, w_out[0], preferred_element_type=jnp.float32) + b_out[0]
    x = x + attn

    # ---- x = x + mlp(ln_2(x)) ----
    h2 = _layernorm(x, ln2_g[0], ln2_b[0]).astype(bf16)
    fc = jnp.dot(h2, w_fc[0], preferred_element_type=jnp.float32) + b_fc[0]
    fc = fc * jax.nn.sigmoid(1.702 * fc)                             # QuickGELU, f32
    mlp = jnp.dot(fc.astype(bf16), w_pr[0], preferred_element_type=jnp.float32) + b_pr[0]
    x_ref[...] = x + mlp                                             # lane-dense [M, 128] store


# ---------------- pallas_call wrapper ----------------

def encode_vit(dp, patches_flat, key_mask, stem_bias_tiled, bp, t_pad):
    """patches_flat: [B*t_pad, k_pad] bf16 -> transformer output [B*t_pad, WIDTH] f32."""
    m_all, k_pad = patches_flat.shape
    m_blk = bp * t_pad
    nb = m_all // m_blk

    const = lambda shape: pl.BlockSpec(shape, lambda b, l: (0, 0))
    perlayer = lambda shape: pl.BlockSpec((1,) + shape, lambda b, l: (l, 0, 0))

    kernel = functools.partial(_vit_kernel, bp, t_pad)
    # TODO(synk): at CLIP width 1024 mark the constant (stem) weights pl.Buffered(1) and
    # tile w_fc/w_pr along MLP_DIM so the working set fits v7x's 64 MiB VMEM.
    return pl.pallas_call(
        kernel,
        out_shape=jax.ShapeDtypeStruct((m_all, WIDTH), jnp.float32),
        grid=(nb, LAYERS),
        in_specs=[
            pl.BlockSpec((m_blk, k_pad), lambda b, l: (b, 0)),       # patches (per batch block)
            const((1, t_pad)),                                       # key-padding mask bias
            const((k_pad, WIDTH)),                                   # conv1 weight (pre-transposed)
            const((m_blk, WIDTH)),                                   # pos_emb(+cls), tiled over bp
            const((1, WIDTH)), const((1, WIDTH)),                    # ln_pre gamma/beta
            perlayer((1, WIDTH)), perlayer((1, WIDTH)),              # ln1 gamma/beta
            perlayer((WIDTH, 3 * WIDTH)), perlayer((1, 3 * WIDTH)),  # qkv
            perlayer((WIDTH, WIDTH)), perlayer((1, WIDTH)),          # attn out proj
            perlayer((1, WIDTH)), perlayer((1, WIDTH)),              # ln2 gamma/beta
            perlayer((WIDTH, MLP_DIM)), perlayer((1, MLP_DIM)),      # mlp fc
            perlayer((MLP_DIM, WIDTH)), perlayer((1, WIDTH)),        # mlp proj
        ],
        out_specs=pl.BlockSpec((m_blk, WIDTH), lambda b, l: (b, 0)),  # layer-invariant: resident
        compiler_params=pltpu.CompilerParams(
            dimension_semantics=("parallel", "arbitrary"),
            vmem_limit_bytes=_VMEM_LIMIT),
    )(patches_flat, key_mask, dp["conv_w"], stem_bias_tiled,
      dp["ln_pre_g"], dp["ln_pre_b"],
      dp["ln1_g"], dp["ln1_b"], dp["w_qkv"], dp["b_qkv"], dp["w_out"], dp["b_out"],
      dp["ln2_g"], dp["ln2_b"], dp["w_fc"], dp["b_fc"], dp["w_pr"], dp["b_pr"])


# ---------------- parameter init (deterministic, synthetic) ----------------
# TODO(synk): real ClipWrapper loads pretrained ViT-L/14 fp16 weights via clip.load();
# here the weights are synthetic at reduced width/depth.

def init_params(key, n_tokens):
    def nrm(k, shape, scale=0.02):
        return scale * jax.random.normal(k, shape, jnp.float32)

    keys = iter(jax.random.split(key, 8 + 8 * LAYERS))
    params = {
        "conv_w": nrm(next(keys), (3 * PATCH * PATCH, WIDTH)),   # conv1 (bias=False), pre-transposed
        "class_emb": nrm(next(keys), (WIDTH,)),
        "pos_emb": nrm(next(keys), (n_tokens, WIDTH)),
        "ln_pre_g": jnp.ones((WIDTH,), jnp.float32),
        "ln_pre_b": jnp.zeros((WIDTH,), jnp.float32),
        "ln_post_g": jnp.ones((WIDTH,), jnp.float32),
        "ln_post_b": jnp.zeros((WIDTH,), jnp.float32),
        "proj": nrm(next(keys), (WIDTH, OUT_DIM)),
    }
    layers = []
    for _ in range(LAYERS):
        layers.append({
            "ln1_g": jnp.ones((WIDTH,), jnp.float32),
            "ln1_b": jnp.zeros((WIDTH,), jnp.float32),
            "w_qkv": nrm(next(keys), (WIDTH, 3 * WIDTH)),
            "b_qkv": nrm(next(keys), (3 * WIDTH,)),
            "w_out": nrm(next(keys), (WIDTH, WIDTH)),
            "b_out": nrm(next(keys), (WIDTH,)),
            "ln2_g": jnp.ones((WIDTH,), jnp.float32),
            "ln2_b": jnp.zeros((WIDTH,), jnp.float32),
            "w_fc": nrm(next(keys), (WIDTH, MLP_DIM)),
            "b_fc": nrm(next(keys), (MLP_DIM,)),
            "w_pr": nrm(next(keys), (MLP_DIM, WIDTH)),
            "b_pr": nrm(next(keys), (WIDTH,)),
        })
    params["layers"] = layers
    return params


def prepare_params(params):
    """One-time device-side prep: bf16 MXU weight matrices, 1-row f32 biases, K-padded
    conv weight, class-token folded into pos_emb row 0, attention scale folded into the
    Q columns of w_qkv/b_qkv, and every per-layer tensor stacked with a leading LAYERS dim
    so one pallas_call can index layers via its grid."""
    bf = lambda w: w.astype(jnp.bfloat16)
    row = lambda v: v.reshape(1, -1).astype(jnp.float32)

    K = params["conv_w"].shape[0]
    k_pad = ((K + 127) // 128) * 128
    conv_w_p = jnp.zeros((k_pad, WIDTH), jnp.float32).at[:K].set(params["conv_w"])
    stem_bias = params["pos_emb"].at[0].add(params["class_emb"]).astype(jnp.float32)

    scale = HEAD_DIM ** -0.5
    def prep_layer(lp):
        w_qkv = lp["w_qkv"].at[:, :WIDTH].multiply(scale)   # fold 1/sqrt(d) into Q
        b_qkv = lp["b_qkv"].at[:WIDTH].multiply(scale)
        return {
            "ln1_g": row(lp["ln1_g"]), "ln1_b": row(lp["ln1_b"]),
            "w_qkv": bf(w_qkv), "b_qkv": row(b_qkv),
            "w_out": bf(lp["w_out"]), "b_out": row(lp["b_out"]),
            "ln2_g": row(lp["ln2_g"]), "ln2_b": row(lp["ln2_b"]),
            "w_fc": bf(lp["w_fc"]), "b_fc": row(lp["b_fc"]),
            "w_pr": bf(lp["w_pr"]), "b_pr": row(lp["b_pr"]),
        }

    prepped = [prep_layer(lp) for lp in params["layers"]]
    stacked = {k: jnp.stack([p[k] for p in prepped]) for k in prepped[0]}

    dp = {
        "conv_w": bf(conv_w_p),
        "stem_bias": stem_bias,
        "ln_pre_g": row(params["ln_pre_g"]), "ln_pre_b": row(params["ln_pre_b"]),
        "ln_post_g": params["ln_post_g"], "ln_post_b": params["ln_post_b"],
        "proj": params["proj"],
    }
    dp.update(stacked)
    return dp


# ---------------- forward pass (== clip_model.encode_image) ----------------

def clip_encode_image(dp, x):
    """x: NCHW float32 [B, 3, H, W] -> image features [B, OUT_DIM]."""
    B, C, H, W_img = x.shape
    gh, gw = H // PATCH, W_img // PATCH
    n_patches = gh * gw
    n_tok = n_patches + 1
    t_pad = ((n_tok + 7) // 8) * 8          # pad tokens to a sublane multiple of 8
    K = C * PATCH * PATCH
    k_pad = dp["conv_w"].shape[0]

    # non-overlapping patches, flattened in (C, ph, pw) order to match the conv weight;
    # prepend a zero class-token row, zero-pad tokens to t_pad and the contraction to k_pad.
    patches = (x.reshape(B, C, gh, PATCH, gw, PATCH)
                 .transpose(0, 2, 4, 1, 3, 5)
                 .reshape(B, n_patches, K))
    patches = jnp.pad(patches, ((0, 0), (1, t_pad - n_tok), (0, k_pad - K)))
    patches_flat = patches.reshape(B * t_pad, k_pad).astype(jnp.bfloat16)

    # images per grid step: target >=256 matmul rows (v6e/v7x MXU) while keeping the
    # "parallel" batch grid axis available for v7x megacore sharding at larger B.
    want = max(1, -(-256 // t_pad))
    bp = max(d for d in range(1, B + 1) if B % d == 0 and d <= want)

    stem_bias = jnp.pad(dp["stem_bias"], ((0, t_pad - n_tok), (0, 0)))
    stem_bias_tiled = jnp.tile(stem_bias, (bp, 1))                       # [bp*t_pad, WIDTH]
    key_mask = jnp.where(jnp.arange(t_pad) < n_tok, 0.0, -1e30)
    key_mask = key_mask.astype(jnp.float32).reshape(1, t_pad)

    xt = encode_vit(dp, patches_flat, key_mask, stem_bias_tiled, bp, t_pad)   # [B*t_pad, WIDTH]

    # Tail in plain JAX per perf review: M=B rows pads to 8 sublanes and extra
    # pallas_call launches cost more than the compute, so leave it to XLA.
    cls_out = xt.reshape(B, t_pad, WIDTH)[:, 0, :]
    cls_out = _layernorm(cls_out, dp["ln_post_g"], dp["ln_post_b"])
    return cls_out @ dp["proj"]


if __name__ == "__main__":
    key = jax.random.PRNGKey(0)
    kx, kp = jax.random.split(key)

    B, C, H, W = 2, 3, 32, 32
    x = jax.random.normal(kx, (B, C, H, W), jnp.float32)

    n_tokens = (H // PATCH) * (W // PATCH) + 1
    params = init_params(kp, n_tokens)
    dp = prepare_params(params)

    fwd = jax.jit(clip_encode_image)
    out = jax.block_until_ready(fwd(dp, x))
    assert out.shape == (B, OUT_DIM), out.shape
    assert bool(jnp.all(jnp.isfinite(out)))
    print("KERNEL_OK")
</pallas_src>

<mosaic_0001>
module attributes {stable_mosaic.version = 11 : i64} {
  func.func @_vit_kernel(%arg0: i32, %arg1: i32, %arg2: memref<48x256xbf16, #tpu.memory_space<vmem>>, %arg3: memref<1x24xf32, #tpu.memory_space<vmem>>, %arg4: memref<256x128xbf16, #tpu.memory_space<vmem>>, %arg5: memref<48x128xf32, #tpu.memory_space<vmem>>, %arg6: memref<1x128xf32, #tpu.memory_space<vmem>>, %arg7: memref<1x128xf32, #tpu.memory_space<vmem>>, %arg8: memref<1x1x128xf32, #tpu.memory_space<vmem>>, %arg9: memref<1x1x128xf32, #tpu.memory_space<vmem>>, %arg10: memref<1x128x384xbf16, #tpu.memory_space<vmem>>, %arg11: memref<1x1x384xf32, #tpu.memory_space<vmem>>, %arg12: memref<1x128x128xbf16, #tpu.memory_space<vmem>>, %arg13: memref<1x1x128xf32, #tpu.memory_space<vmem>>, %arg14: memref<1x1x128xf32, #tpu.memory_space<vmem>>, %arg15: memref<1x1x128xf32, #tpu.memory_space<vmem>>, %arg16: memref<1x128x512xbf16, #tpu.memory_space<vmem>>, %arg17: memref<1x1x512xf32, #tpu.memory_space<vmem>>, %arg18: memref<1x512x128xbf16, #tpu.memory_space<vmem>>, %arg19: memref<1x1x128xf32, #tpu.memory_space<vmem>>, %arg20: memref<48x128xf32, #tpu.memory_space<vmem>>) attributes {dimension_semantics = [#tpu.dimension_semantics<parallel>, #tpu.dimension_semantics<arbitrary>], iteration_bounds = array<i64: 1, 2>, scalar_prefetch = 0 : i64, scratch_operands = 0 : i64, tpu.core_type = #tpu.core_type<tc>, window_params = [{transform_indices = @transform_0, window_bounds = array<i64: 48, 256>}, {pipeline_mode = #tpu.pipeline_mode<synchronous>, transform_indices = @transform_1, window_bounds = array<i64: 1, 24>}, {pipeline_mode = #tpu.pipeline_mode<synchronous>, transform_indices = @transform_2, window_bounds = array<i64: 256, 128>}, {pipeline_mode = #tpu.pipeline_mode<synchronous>, transform_indices = @transform_3, window_bounds = array<i64: 48, 128>}, {pipeline_mode = #tpu.pipeline_mode<synchronous>, transform_indices = @transform_4, window_bounds = array<i64: 1, 128>}, {pipeline_mode = #tpu.pipeline_mode<synchronous>, transform_indices = @transform_5, window_bounds = array<i64: 1, 128>}, {transform_indices = @transform_6, window_bounds = array<i64: 1, 1, 128>}, {transform_indices = @transform_7, window_bounds = array<i64: 1, 1, 128>}, {transform_indices = @transform_8, window_bounds = array<i64: 1, 128, 384>}, {transform_indices = @transform_9, window_bounds = array<i64: 1, 1, 384>}, {transform_indices = @transform_10, window_bounds = array<i64: 1, 128, 128>}, {transform_indices = @transform_11, window_bounds = array<i64: 1, 1, 128>}, {transform_indices = @transform_12, window_bounds = array<i64: 1, 1, 128>}, {transform_indices = @transform_13, window_bounds = array<i64: 1, 1, 128>}, {transform_indices = @transform_14, window_bounds = array<i64: 1, 128, 512>}, {transform_indices = @transform_15, window_bounds = array<i64: 1, 1, 512>}, {transform_indices = @transform_16, window_bounds = array<i64: 1, 512, 128>}, {transform_indices = @transform_17, window_bounds = array<i64: 1, 1, 128>}, {transform_indices = @transform_18, window_bounds = array<i64: 48, 128>}]} {
    %c0_i32 = arith.constant 0 : i32
    %0 = arith.cmpi eq, %arg1, %c0_i32 : i32
    %1 = arith.extui %0 : i1 to i32
    %c0_i32_0 = arith.constant 0 : i32
    %2 = arith.cmpi ne, %1, %c0_i32_0 : i32
    scf.if %2 {
      %c0_73 = arith.constant 0 : index
      %c0_74 = arith.constant 0 : index
      %168 = vector.load %arg2[%c0_73, %c0_74] : memref<48x256xbf16, #tpu.memory_space<vmem>>, vector<48x256xbf16>
      %c0_75 = arith.constant 0 : index
      %c0_76 = arith.constant 0 : index
      %169 = vector.load %arg4[%c0_75, %c0_76] : memref<256x128xbf16, #tpu.memory_space<vmem>>, vector<256x128xbf16>
      %cst_77 = arith.constant dense<0.000000e+00> : vector<48x128xf32>
      %170 = tpu.matmul %168, %169, %cst_77 {dimension_numbers = #tpu.dot_dimension_numbers<[1], [0], [0], [1], [0, 0, 1, 1], [], []>} : vector<48x256xbf16>, vector<256x128xbf16>, vector<48x128xf32> -> vector<48x128xf32>
      %c0_78 = arith.constant 0 : index
      %c0_79 = arith.constant 0 : index
      %171 = vector.load %arg5[%c0_78, %c0_79] : memref<48x128xf32, #tpu.memory_space<vmem>>, vector<48x128xf32>
      %172 = arith.addf %170, %171 : vector<48x128xf32>
      %c0_80 = arith.constant 0 : index
      %c0_81 = arith.constant 0 : index
      %173 = vector.load %arg6[%c0_80, %c0_81] : memref<1x128xf32, #tpu.memory_space<vmem>>, vector<1x128xf32>
      %c0_82 = arith.constant 0 : index
      %c0_83 = arith.constant 0 : index
      %174 = vector.load %arg7[%c0_82, %c0_83] : memref<1x128xf32, #tpu.memory_space<vmem>>, vector<1x128xf32>
      %cst_84 = arith.constant dense<0.000000e+00> : vector<48xf32>
      %175 = vector.multi_reduction <add>, %172, %cst_84 [1] : vector<48x128xf32> to vector<48xf32>
      %176 = vector.shape_cast %175 : vector<48xf32> to vector<48x1xf32>
      %cst_85 = arith.constant 1.280000e+02 : f32
      %177 = vector.broadcast %cst_85 : f32 to vector<48x1xf32>
      %178 = arith.divf %176, %177 : vector<48x1xf32>
      %179 = vector.broadcast %178 : vector<48x1xf32> to vector<48x128xf32>
      %180 = arith.subf %172, %179 : vector<48x128xf32>
      %181 = arith.mulf %180, %180 : vector<48x128xf32>
      %cst_86 = arith.constant dense<0.000000e+00> : vector<48xf32>
      %182 = vector.multi_reduction <add>, %181, %cst_86 [1] : vector<48x128xf32> to vector<48xf32>
      %183 = vector.shape_cast %182 : vector<48xf32> to vector<48x1xf32>
      %cst_87 = arith.constant 1.280000e+02 : f32
      %184 = vector.broadcast %cst_87 : f32 to vector<48x1xf32>
      %185 = arith.divf %183, %184 : vector<48x1xf32>
      %cst_88 = arith.constant 9.99999974E-6 : f32
      %186 = vector.broadcast %cst_88 : f32 to vector<48x1xf32>
      %187 = arith.addf %185, %186 : vector<48x1xf32>
      %188 = math.rsqrt %187 : vector<48x1xf32>
      %189 = vector.broadcast %188 : vector<48x1xf32> to vector<48x128xf32>
      %190 = arith.mulf %180, %189 : vector<48x128xf32>
      %191 = vector.broadcast %173 : vector<1x128xf32> to vector<48x128xf32>
      %192 = arith.mulf %190, %191 : vector<48x128xf32>
      %193 = vector.broadcast %174 : vector<1x128xf32> to vector<48x128xf32>
      %194 = arith.addf %192, %193 : vector<48x128xf32>
      %c0_89 = arith.constant 0 : index
      %c0_90 = arith.constant 0 : index
      %195 = vector.load %arg20[%c0_89, %c0_90] : memref<48x128xf32, #tpu.memory_space<vmem>>, vector<48x128xf32>
      tpu.vector_store %arg20[%c0_89, %c0_90], %194 {strides = array<i32>} : memref<48x128xf32, #tpu.memory_space<vmem>>, vector<48x128xf32>,
    } else {
    }
    %c0 = arith.constant 0 : index
    %c0_1 = arith.constant 0 : index
    %3 = vector.load %arg20[%c0, %c0_1] : memref<48x128xf32, #tpu.memory_space<vmem>>, vector<48x128xf32>
    %c0_2 = arith.constant 0 : index
    %c0_3 = arith.constant 0 : index
    %c0_4 = arith.constant 0 : index
    %4 = vector.load %arg8[%c0_2, %c0_3, %c0_4] : memref<1x1x128xf32, #tpu.memory_space<vmem>>, vector<1x1x128xf32>
    %5 = vector.shape_cast %4 : vector<1x1x128xf32> to vector<1x128xf32>
    %c0_5 = arith.constant 0 : index
    %c0_6 = arith.constant 0 : index
    %c0_7 = arith.constant 0 : index
    %6 = vector.load %arg9[%c0_5, %c0_6, %c0_7] : memref<1x1x128xf32, #tpu.memory_space<vmem>>, vector<1x1x128xf32>
    %7 = vector.shape_cast %6 : vector<1x1x128xf32> to vector<1x128xf32>
    %cst = arith.constant dense<0.000000e+00> : vector<48xf32>
    %8 = vector.multi_reduction <add>, %3, %cst [1] : vector<48x128xf32> to vector<48xf32>
    %9 = vector.shape_cast %8 : vector<48xf32> to vector<48x1xf32>
    %cst_8 = arith.constant 1.280000e+02 : f32
    %10 = vector.broadcast %cst_8 : f32 to vector<48x1xf32>
    %11 = arith.divf %9, %10 : vector<48x1xf32>
    %12 = vector.broadcast %11 : vector<48x1xf32> to vector<48x128xf32>
    %13 = arith.subf %3, %12 : vector<48x128xf32>
    %14 = arith.mulf %13, %13 : vector<48x128xf32>
    %cst_9 = arith.constant dense<0.000000e+00> : vector<48xf32>
    %15 = vector.multi_reduction <add>, %14, %cst_9 [1] : vector<48x128xf32> to vector<48xf32>
    %16 = vector.shape_cast %15 : vector<48xf32> to vector<48x1xf32>
    %cst_10 = arith.constant 1.280000e+02 : f32
    %17 = vector.broadcast %cst_10 : f32 to vector<48x1xf32>
    %18 = arith.divf %16, %17 : vector<48x1xf32>
    %cst_11 = arith.constant 9.99999974E-6 : f32
    %19 = vector.broadcast %cst_11 : f32 to vector<48x1xf32>
    %20 = arith.addf %18, %19 : vector<48x1xf32>
    %21 = math.rsqrt %20 : vector<48x1xf32>
    %22 = vector.broadcast %21 : vector<48x1xf32> to vector<48x128xf32>
    %23 = arith.mulf %13, %22 : vector<48x128xf32>
    %24 = vector.broadcast %5 : vector<1x128xf32> to vector<48x128xf32>
    %25 = arith.mulf %23, %24 : vector<48x128xf32>
    %26 = vector.broadcast %7 : vector<1x128xf32> to vector<48x128xf32>
    %27 = arith.addf %25, %26 : vector<48x128xf32>
    %28 = arith.truncf %27 : vector<48x128xf32> to vector<48x128xbf16>
    %c0_12 = arith.constant 0 : index
    %c0_13 = arith.constant 0 : index
    %c0_14 = arith.constant 0 : index
    %29 = vector.load %arg10[%c0_12, %c0_13, %c0_14] : memref<1x128x384xbf16, #tpu.memory_space<vmem>>, vector<1x128x384xbf16>
    %30 = vector.shape_cast %29 : vector<1x128x384xbf16> to vector<128x384xbf16>
    %cst_15 = arith.constant dense<0.000000e+00> : vector<48x384xf32>
    %31 = tpu.matmul %28, %30, %cst_15 {dimension_numbers = #tpu.dot_dimension_numbers<[1], [0], [0], [1], [0, 0, 1, 1], [], []>} : vector<48x128xbf16>, vector<128x384xbf16>, vector<48x384xf32> -> vector<48x384xf32>
    %c0_16 = arith.constant 0 : index
    %c0_17 = arith.constant 0 : index
    %c0_18 = arith.constant 0 : index
    %32 = vector.load %arg11[%c0_16, %c0_17, %c0_18] : memref<1x1x384xf32, #tpu.memory_space<vmem>>, vector<1x1x384xf32>
    %33 = vector.shape_cast %32 : vector<1x1x384xf32> to vector<1x384xf32>
    %34 = vector.broadcast %33 : vector<1x384xf32> to vector<48x384xf32>
    %35 = arith.addf %31, %34 : vector<48x384xf32>
    %36 = arith.truncf %35 : vector<48x384xf32> to vector<48x384xbf16>
    %c0_19 = arith.constant 0 : index
    %c0_20 = arith.constant 0 : index
    %37 = vector.load %arg3[%c0_19, %c0_20] : memref<1x24xf32, #tpu.memory_space<vmem>>, vector<1x24xf32>
    %38 = vector.extract_strided_slice %36 {offsets = [0, 0], sizes = [24, 64], strides = [1, 1]} : vector<48x384xbf16> to vector<24x64xbf16>
    %39 = vector.extract_strided_slice %36 {offsets = [0, 128], sizes = [24, 64], strides = [1, 1]} : vector<48x384xbf16> to vector<24x64xbf16>
    %40 = vector.extract_strided_slice %36 {offsets = [0, 256], sizes = [24, 64], strides = [1, 1]} : vector<48x384xbf16> to vector<24x64xbf16>
    %cst_21 = arith.constant dense<0.000000e+00> : vector<24x24xf32>
    %41 = tpu.matmul %38, %39, %cst_21 {dimension_numbers = #tpu.dot_dimension_numbers<[1], [1], [0], [0], [0, 0, 1, 0], [], []>} : vector<24x64xbf16>, vector<24x64xbf16>, vector<24x24xf32> -> vector<24x24xf32>
    %42 = vector.broadcast %37 : vector<1x24xf32> to vector<24x24xf32>
    %43 = arith.addf %41, %42 : vector<24x24xf32>
    %cst_22 = arith.constant dense<0xFF800000> : vector<24xf32>
    %44 = vector.multi_reduction <maximumf>, %43, %cst_22 [1] : vector<24x24xf32> to vector<24xf32>
    %45 = vector.shape_cast %44 : vector<24xf32> to vector<24x1xf32>
    %46 = vector.broadcast %45 : vector<24x1xf32> to vector<24x24xf32>
    %47 = arith.subf %43, %46 : vector<24x24xf32>
    %48 = math.exp %47 : vector<24x24xf32>
    %cst_23 = arith.constant dense<0.000000e+00> : vector<24xf32>
    %49 = vector.multi_reduction <add>, %48, %cst_23 [1] : vector<24x24xf32> to vector<24xf32>
    %50 = vector.shape_cast %49 : vector<24xf32> to vector<24x1xf32>
    %51 = vector.broadcast %50 : vector<24x1xf32> to vector<24x24xf32>
    %52 = arith.divf %48, %51 : vector<24x24xf32>
    %53 = arith.truncf %52 : vector<24x24xf32> to vector<24x24xbf16>
    %cst_24 = arith.constant dense<0.000000e+00> : vector<24x64xf32>
    %54 = tpu.matmul %53, %40, %cst_24 {dimension_numbers = #tpu.dot_dimension_numbers<[1], [0], [0], [1], [0, 0, 1, 1], [], []>} : vector<24x24xbf16>, vector<24x64xbf16>, vector<24x64xf32> -> vector<24x64xf32>
    %55 = vector.extract_strided_slice %36 {offsets = [0, 64], sizes = [24, 64], strides = [1, 1]} : vector<48x384xbf16> to vector<24x64xbf16>
    %56 = vector.extract_strided_slice %36 {offsets = [0, 192], sizes = [24, 64], strides = [1, 1]} : vector<48x384xbf16> to vector<24x64xbf16>
    %57 = vector.extract_strided_slice %36 {offsets = [0, 320], sizes = [24, 64], strides = [1, 1]} : vector<48x384xbf16> to vector<24x64xbf16>
    %cst_25 = arith.constant dense<0.000000e+00> : vector<24x24xf32>
    %58 = tpu.matmul %55, %56, %cst_25 {dimension_numbers = #tpu.dot_dimension_numbers<[1], [1], [0], [0], [0, 0, 1, 0], [], []>} : vector<24x64xbf16>, vector<24x64xbf16>, vector<24x24xf32> -> vector<24x24xf32>
    %59 = vector.broadcast %37 : vector<1x24xf32> to vector<24x24xf32>
    %60 = arith.addf %58, %59 : vector<24x24xf32>
    %cst_26 = arith.constant dense<0xFF800000> : vector<24xf32>
    %61 = vector.multi_reduction <maximumf>, %60, %cst_26 [1] : vector<24x24xf32> to vector<24xf32>
    %62 = vector.shape_cast %61 : vector<24xf32> to vector<24x1xf32>
    %63 = vector.broadcast %62 : vector<24x1xf32> to vector<24x24xf32>
    %64 = arith.subf %60, %63 : vector<24x24xf32>
    %65 = math.exp %64 : vector<24x24xf32>
    %cst_27 = arith.constant dense<0.000000e+00> : vector<24xf32>
    %66 = vector.multi_reduction <add>, %65, %cst_27 [1] : vector<24x24xf32> to vector<24xf32>
    %67 = vector.shape_cast %66 : vector<24xf32> to vector<24x1xf32>
    %68 = vector.broadcast %67 : vector<24x1xf32> to vector<24x24xf32>
    %69 = arith.divf %65, %68 : vector<24x24xf32>
    %70 = arith.truncf %69 : vector<24x24xf32> to vector<24x24xbf16>
    %cst_28 = arith.constant dense<0.000000e+00> : vector<24x64xf32>
    %71 = tpu.matmul %70, %57, %cst_28 {dimension_numbers = #tpu.dot_dimension_numbers<[1], [0], [0], [1], [0, 0, 1, 1], [], []>} : vector<24x24xbf16>, vector<24x64xbf16>, vector<24x64xf32> -> vector<24x64xf32>
    %72 = tpu.concatenate %54, %71 in 1 : vector<24x64xf32>, vector<24x64xf32> -> vector<24x128xf32>
    %73 = vector.extract_strided_slice %36 {offsets = [24, 0], sizes = [24, 64], strides = [1, 1]} : vector<48x384xbf16> to vector<24x64xbf16>
    %74 = vector.extract_strided_slice %36 {offsets = [24, 128], sizes = [24, 64], strides = [1, 1]} : vector<48x384xbf16> to vector<24x64xbf16>
    %75 = vector.extract_strided_slice %36 {offsets = [24, 256], sizes = [24, 64], strides = [1, 1]} : vector<48x384xbf16> to vector<24x64xbf16>
    %cst_29 = arith.constant dense<0.000000e+00> : vector<24x24xf32>
    %76 = tpu.matmul %73, %74, %cst_29 {dimension_numbers = #tpu.dot_dimension_numbers<[1], [1], [0], [0], [0, 0, 1, 0], [], []>} : vector<24x64xbf16>, vector<24x64xbf16>, vector<24x24xf32> -> vector<24x24xf32>
    %77 = vector.broadcast %37 : vector<1x24xf32> to vector<24x24xf32>
    %78 = arith.addf %76, %77 : vector<24x24xf32>
    %cst_30 = arith.constant dense<0xFF800000> : vector<24xf32>
    %79 = vector.multi_reduction <maximumf>, %78, %cst_30 [1] : vector<24x24xf32> to vector<24xf32>
    %80 = vector.shape_cast %79 : vector<24xf32> to vector<24x1xf32>
    %81 = vector.broadcast %80 : vector<24x1xf32> to vector<24x24xf32>
    %82 = arith.subf %78, %81 : vector<24x24xf32>
    %83 = math.exp %82 : vector<24x24xf32>
    %cst_31 = arith.constant dense<0.000000e+00> : vector<24xf32>
    %84 = vector.multi_reduction <add>, %83, %cst_31 [1] : vector<24x24xf32> to vector<24xf32>
    %85 = vector.shape_cast %84 : vector<24xf32> to vector<24x1xf32>
    %86 = vector.broadcast %85 : vector<24x1xf32> to vector<24x24xf32>
    %87 = arith.divf %83, %86 : vector<24x24xf32>
    %88 = arith.truncf %87 : vector<24x24xf32> to vector<24x24xbf16>
    %cst_32 = arith.constant dense<0.000000e+00> : vector<24x64xf32>
    %89 = tpu.matmul %88, %75, %cst_32 {dimension_numbers = #tpu.dot_dimension_numbers<[1], [0], [0], [1], [0, 0, 1, 1], [], []>} : vector<24x24xbf16>, vector<24x64xbf16>, vector<24x64xf32> -> vector<24x64xf32>
    %90 = vector.extract_strided_slice %36 {offsets = [24, 64], sizes = [24, 64], strides = [1, 1]} : vector<48x384xbf16> to vector<24x64xbf16>
    %91 = vector.extract_strided_slice %36 {offsets = [24, 192], sizes = [24, 64], strides = [1, 1]} : vector<48x384xbf16> to vector<24x64xbf16>
    %92 = vector.extract_strided_slice %36 {offsets = [24, 320], sizes = [24, 64], strides = [1, 1]} : vector<48x384xbf16> to vector<24x64xbf16>
    %cst_33 = arith.constant dense<0.000000e+00> : vector<24x24xf32>
    %93 = tpu.matmul %90, %91, %cst_33 {dimension_numbers = #tpu.dot_dimension_numbers<[1], [1], [0], [0], [0, 0, 1, 0], [], []>} : vector<24x64xbf16>, vector<24x64xbf16>, vector<24x24xf32> -> vector<24x24xf32>
    %94 = vector.broadcast %37 : vector<1x24xf32> to vector<24x24xf32>
    %95 = arith.addf %93, %94 : vector<24x24xf32>
    %cst_34 = arith.constant dense<0xFF800000> : vector<24xf32>
    %96 = vector.multi_reduction <maximumf>, %95, %cst_34 [1] : vector<24x24xf32> to vector<24xf32>
    %97 = vector.shape_cast %96 : vector<24xf32> to vector<24x1xf32>
    %98 = vector.broadcast %97 : vector<24x1xf32> to vector<24x24xf32>
    %99 = arith.subf %95, %98 : vector<24x24xf32>
    %100 = math.exp %99 : vector<24x24xf32>
    %cst_35 = arith.constant dense<0.000000e+00> : vector<24xf32>
    %101 = vector.multi_reduction <add>, %100, %cst_35 [1] : vector<24x24xf32> to vector<24xf32>
    %102 = vector.shape_cast %101 : vector<24xf32> to vector<24x1xf32>
    %103 = vector.broadcast %102 : vector<24x1xf32> to vector<24x24xf32>
    %104 = arith.divf %100, %103 : vector<24x24xf32>
    %105 = arith.truncf %104 : vector<24x24xf32> to vector<24x24xbf16>
    %cst_36 = arith.constant dense<0.000000e+00> : vector<24x64xf32>
    %106 = tpu.matmul %105, %92, %cst_36 {dimension_numbers = #tpu.dot_dimension_numbers<[1], [0], [0], [1], [0, 0, 1, 1], [], []>} : vector<24x24xbf16>, vector<24x64xbf16>, vector<24x64xf32> -> vector<24x64xf32>
    %107 = tpu.concatenate %89, %106 in 1 : vector<24x64xf32>, vector<24x64xf32> -> vector<24x128xf32>
    %108 = tpu.concatenate %72, %107 in 0 : vector<24x128xf32>, vector<24x128xf32> -> vector<48x128xf32>
    %109 = arith.truncf %108 : vector<48x128xf32> to vector<48x128xbf16>
    %c0_37 = arith.constant 0 : index
    %c0_38 = arith.constant 0 : index
    %c0_39 = arith.constant 0 : index
    %110 = vector.load %arg12[%c0_37, %c0_38, %c0_39] : memref<1x128x128xbf16, #tpu.memory_space<vmem>>, vector<1x128x128xbf16>
    %111 = vector.shape_cast %110 : vector<1x128x128xbf16> to vector<128x128xbf16>
    %cst_40 = arith.constant dense<0.000000e+00> : vector<48x128xf32>
    %112 = tpu.matmul %109, %111, %cst_40 {dimension_numbers = #tpu.dot_dimension_numbers<[1], [0], [0], [1], [0, 0, 1, 1], [], []>} : vector<48x128xbf16>, vector<128x128xbf16>, vector<48x128xf32> -> vector<48x128xf32>
    %c0_41 = arith.constant 0 : index
    %c0_42 = arith.constant 0 : index
    %c0_43 = arith.constant 0 : index
    %113 = vector.load %arg13[%c0_41, %c0_42, %c0_43] : memref<1x1x128xf32, #tpu.memory_space<vmem>>, vector<1x1x128xf32>
    %114 = vector.shape_cast %113 : vector<1x1x128xf32> to vector<1x128xf32>
    %115 = vector.broadcast %114 : vector<1x128xf32> to vector<48x128xf32>
    %116 = arith.addf %112, %115 : vector<48x128xf32>
    %117 = arith.addf %3, %116 : vector<48x128xf32>
    %c0_44 = arith.constant 0 : index
    %c0_45 = arith.constant 0 : index
    %c0_46 = arith.constant 0 : index
    %118 = vector.load %arg14[%c0_44, %c0_45, %c0_46] : memref<1x1x128xf32, #tpu.memory_space<vmem>>, vector<1x1x128xf32>
    %119 = vector.shape_cast %118 : vector<1x1x128xf32> to vector<1x128xf32>
    %c0_47 = arith.constant 0 : index
    %c0_48 = arith.constant 0 : index
    %c0_49 = arith.constant 0 : index
    %120 = vector.load %arg15[%c0_47, %c0_48, %c0_49] : memref<1x1x128xf32, #tpu.memory_space<vmem>>, vector<1x1x128xf32>
    %121 = vector.shape_cast %120 : vector<1x1x128xf32> to vector<1x128xf32>
    %cst_50 = arith.constant dense<0.000000e+00> : vector<48xf32>
    %122 = vector.multi_reduction <add>, %117, %cst_50 [1] : vector<48x128xf32> to vector<48xf32>
    %123 = vector.shape_cast %122 : vector<48xf32> to vector<48x1xf32>
    %cst_51 = arith.constant 1.280000e+02 : f32
    %124 = vector.broadcast %cst_51 : f32 to vector<48x1xf32>
    %125 = arith.divf %123, %124 : vector<48x1xf32>
    %126 = vector.broadcast %125 : vector<48x1xf32> to vector<48x128xf32>
    %127 = arith.subf %117, %126 : vector<48x128xf32>
    %128 = arith.mulf %127, %127 : vector<48x128xf32>
    %cst_52 = arith.constant dense<0.000000e+00> : vector<48xf32>
    %129 = vector.multi_reduction <add>, %128, %cst_52 [1] : vector<48x128xf32> to vector<48xf32>
    %130 = vector.shape_cast %129 : vector<48xf32> to vector<48x1xf32>
    %cst_53 = arith.constant 1.280000e+02 : f32
    %131 = vector.broadcast %cst_53 : f32 to vector<48x1xf32>
    %132 = arith.divf %130, %131 : vector<48x1xf32>
    %cst_54 = arith.constant 9.99999974E-6 : f32
    %133 = vector.broadcast %cst_54 : f32 to vector<48x1xf32>
    %134 = arith.addf %132, %133 : vector<48x1xf32>
    %135 = math.rsqrt %134 : vector<48x1xf32>
    %136 = vector.broadcast %135 : vector<48x1xf32> to vector<48x128xf32>
    %137 = arith.mulf %127, %136 : vector<48x128xf32>
    %138 = vector.broadcast %119 : vector<1x128xf32> to vector<48x128xf32>
    %139 = arith.mulf %137, %138 : vector<48x128xf32>
    %140 = vector.broadcast %121 : vector<1x128xf32> to vector<48x128xf32>
    %141 = arith.addf %139, %140 : vector<48x128xf32>
    %142 = arith.truncf %141 : vector<48x128xf32> to vector<48x128xbf16>
    %c0_55 = arith.constant 0 : index
    %c0_56 = arith.constant 0 : index
    %c0_57 = arith.constant 0 : index
    %143 = vector.load %arg16[%c0_55, %c0_56, %c0_57] : memref<1x128x512xbf16, #tpu.memory_space<vmem>>, vector<1x128x512xbf16>
    %144 = vector.shape_cast %143 : vector<1x128x512xbf16> to vector<128x512xbf16>
    %cst_58 = arith.constant dense<0.000000e+00> : vector<48x512xf32>
    %145 = tpu.matmul %142, %144, %cst_58 {dimension_numbers = #tpu.dot_dimension_numbers<[1], [0], [0], [1], [0, 0, 1, 1], [], []>} : vector<48x128xbf16>, vector<128x512xbf16>, vector<48x512xf32> -> vector<48x512xf32>
    %c0_59 = arith.constant 0 : index
    %c0_60 = arith.constant 0 : index
    %c0_61 = arith.constant 0 : index
    %146 = vector.load %arg17[%c0_59, %c0_60, %c0_61] : memref<1x1x512xf32, #tpu.memory_space<vmem>>, vector<1x1x512xf32>
    %147 = vector.shape_cast %146 : vector<1x1x512xf32> to vector<1x512xf32>
    %148 = vector.broadcast %147 : vector<1x512xf32> to vector<48x512xf32>
    %149 = arith.addf %145, %148 : vector<48x512xf32>
    %cst_62 = arith.constant 1.702000e+00 : f32
    %150 = vector.broadcast %cst_62 : f32 to vector<48x512xf32>
    %151 = arith.mulf %150, %149 : vector<48x512xf32>
    %152 = arith.negf %151 : vector<48x512xf32>
    %153 = math.exp %152 : vector<48x512xf32>
    %cst_63 = arith.constant 1.000000e+00 : f32
    %154 = vector.broadcast %cst_63 : f32 to vector<48x512xf32>
    %155 = arith.addf %154, %153 : vector<48x512xf32>
    %156 = arith.divf %154, %155 : vector<48x512xf32>
    %157 = arith.mulf %149, %156 : vector<48x512xf32>
    %158 = arith.truncf %157 : vector<48x512xf32> to vector<48x512xbf16>
    %c0_64 = arith.constant 0 : index
    %c0_65 = arith.constant 0 : index
    %c0_66 = arith.constant 0 : index
    %159 = vector.load %arg18[%c0_64, %c0_65, %c0_66] : memref<1x512x128xbf16, #tpu.memory_space<vmem>>, vector<1x512x128xbf16>
    %160 = vector.shape_cast %159 : vector<1x512x128xbf16> to vector<512x128xbf16>
    %cst_67 = arith.constant dense<0.000000e+00> : vector<48x128xf32>
    %161 = tpu.matmul %158, %160, %cst_67 {dimension_numbers = #tpu.dot_dimension_numbers<[1], [0], [0], [1], [0, 0, 1, 1], [], []>} : vector<48x512xbf16>, vector<512x128xbf16>, vector<48x128xf32> -> vector<48x128xf32>
    %c0_68 = arith.constant 0 : index
    %c0_69 = arith.constant 0 : index
    %c0_70 = arith.constant 0 : index
    %162 = vector.load %arg19[%c0_68, %c0_69, %c0_70] : memref<1x1x128xf32, #tpu.memory_space<vmem>>, vector<1x1x128xf32>
    %163 = vector.shape_cast %162 : vector<1x1x128xf32> to vector<1x128xf32>
    %164 = vector.broadcast %163 : vector<1x128xf32> to vector<48x128xf32>
    %165 = arith.addf %161, %164 : vector<48x128xf32>
    %166 = arith.addf %117, %165 : vector<48x128xf32>
    %c0_71 = arith.constant 0 : index
    %c0_72 = arith.constant 0 : index
    %167 = vector.load %arg20[%c0_71, %c0_72] : memref<48x128xf32, #tpu.memory_space<vmem>>, vector<48x128xf32>
    tpu.vector_store %arg20[%c0_71, %c0_72], %166 {strides = array<i32>} : memref<48x128xf32, #tpu.memory_space<vmem>>, vector<48x128xf32>,
    return
  }
  func.func @transform_0(%arg0: i32, %arg1: i32) -> (i32, i32) {
    %c0_i32 = arith.constant 0 : i32
    %c0_i32_0 = arith.constant 0 : i32
    return %arg0, %c0_i32 : i32, i32
  }
  func.func @transform_1(%arg0: i32, %arg1: i32) -> (i32, i32) {
    %c0_i32 = arith.constant 0 : i32
    %c0_i32_0 = arith.constant 0 : i32
    %c0_i32_1 = arith.constant 0 : i32
    return %c0_i32, %c0_i32_0 : i32, i32
  }
  func.func @transform_2(%arg0: i32, %arg1: i32) -> (i32, i32) {
    %c0_i32 = arith.constant 0 : i32
    %c0_i32_0 = arith.constant 0 : i32
    %c0_i32_1 = arith.constant 0 : i32
    return %c0_i32, %c0_i32_0 : i32, i32
  }
  func.func @transform_3(%arg0: i32, %arg1: i32) -> (i32, i32) {
    %c0_i32 = arith.constant 0 : i32
    %c0_i32_0 = arith.constant 0 : i32
    %c0_i32_1 = arith.constant 0 : i32
    return %c0_i32, %c0_i32_0 : i32, i32
  }
  func.func @transform_4(%arg0: i32, %arg1: i32) -> (i32, i32) {
    %c0_i32 = arith.constant 0 : i32
    %c0_i32_0 = arith.constant 0 : i32
    %c0_i32_1 = arith.constant 0 : i32
    return %c0_i32, %c0_i32_0 : i32, i32
  }
  func.func @transform_5(%arg0: i32, %arg1: i32) -> (i32, i32) {
    %c0_i32 = arith.constant 0 : i32
    %c0_i32_0 = arith.constant 0 : i32
    %c0_i32_1 = arith.constant 0 : i32
    return %c0_i32, %c0_i32_0 : i32, i32
  }
  func.func @transform_6(%arg0: i32, %arg1: i32) -> (i32, i32, i32) {
    %c0_i32 = arith.constant 0 : i32
    %c0_i32_0 = arith.constant 0 : i32
    %c0_i32_1 = arith.constant 0 : i32
    return %arg1, %c0_i32, %c0_i32_0 : i32, i32, i32
  }
  func.func @transform_7(%arg0: i32, %arg1: i32) -> (i32, i32, i32) {
    %c0_i32 = arith.constant 0 : i32
    %c0_i32_0 = arith.constant 0 : i32
    %c0_i32_1 = arith.constant 0 : i32
    return %arg1, %c0_i32, %c0_i32_0 : i32, i32, i32
  }
  func.func @transform_8(%arg0: i32, %arg1: i32) -> (i32, i32, i32) {
    %c0_i32 = arith.constant 0 : i32
    %c0_i32_0 = arith.constant 0 : i32
    %c0_i32_1 = arith.constant 0 : i32
    return %arg1, %c0_i32, %c0_i32_0 : i32, i32, i32
  }
  func.func @transform_9(%arg0: i32, %arg1: i32) -> (i32, i32, i32) {
    %c0_i32 = arith.constant 0 : i32
    %c0_i32_0 = arith.constant 0 : i32
    %c0_i32_1 = arith.constant 0 : i32
    return %arg1, %c0_i32, %c0_i32_0 : i32, i32, i32
  }
  func.func @transform_10(%arg0: i32, %arg1: i32) -> (i32, i32, i32) {
    %c0_i32 = arith.constant 0 : i32
    %c0_i32_0 = arith.constant 0 : i32
    %c0_i32_1 = arith.constant 0 : i32
    return %arg1, %c0_i32, %c0_i32_0 : i32, i32, i32
  }
  func.func @transform_11(%arg0: i32, %arg1: i32) -> (i32, i32, i32) {
    %c0_i32 = arith.constant 0 : i32
    %c0_i32_0 = arith.constant 0 : i32
    %c0_i32_1 = arith.constant 0 : i32
    return %arg1, %c0_i32, %c0_i32_0 : i32, i32, i32
  }
  func.func @transform_12(%arg0: i32, %arg1: i32) -> (i32, i32, i32) {
    %c0_i32 = arith.constant 0 : i32
    %c0_i32_0 = arith.constant 0 : i32
    %c0_i32_1 = arith.constant 0 : i32
    return %arg1, %c0_i32, %c0_i32_0 : i32, i32, i32
  }
  func.func @transform_13(%arg0: i32, %arg1: i32) -> (i32, i32, i32) {
    %c0_i32 = arith.constant 0 : i32
    %c0_i32_0 = arith.constant 0 : i32
    %c0_i32_1 = arith.constant 0 : i32
    return %arg1, %c0_i32, %c0_i32_0 : i32, i32, i32
  }
  func.func @transform_14(%arg0: i32, %arg1: i32) -> (i32, i32, i32) {
    %c0_i32 = arith.constant 0 : i32
    %c0_i32_0 = arith.constant 0 : i32
    %c0_i32_1 = arith.constant 0 : i32
    return %arg1, %c0_i32, %c0_i32_0 : i32, i32, i32
  }
  func.func @transform_15(%arg0: i32, %arg1: i32) -> (i32, i32, i32) {
    %c0_i32 = arith.constant 0 : i32
    %c0_i32_0 = arith.constant 0 : i32
    %c0_i32_1 = arith.constant 0 : i32
    return %arg1, %c0_i32, %c0_i32_0 : i32, i32, i32
  }
  func.func @transform_16(%arg0: i32, %arg1: i32) -> (i32, i32, i32) {
    %c0_i32 = arith.constant 0 : i32
    %c0_i32_0 = arith.constant 0 : i32
    %c0_i32_1 = arith.constant 0 : i32
    return %arg1, %c0_i32, %c0_i32_0 : i32, i32, i32
  }
  func.func @transform_17(%arg0: i32, %arg1: i32) -> (i32, i32, i32) {
    %c0_i32 = arith.constant 0 : i32
    %c0_i32_0 = arith.constant 0 : i32
    %c0_i32_1 = arith.constant 0 : i32
    return %arg1, %c0_i32, %c0_i32_0 : i32, i32, i32
  }
  func.func @transform_18(%arg0: i32, %arg1: i32) -> (i32, i32) {
    %c0_i32 = arith.constant 0 : i32
    %c0_i32_0 = arith.constant 0 : i32
    return %arg0, %c0_i32 : i32, i32
  }
}

</mosaic_0001>

<bundles_post_ra>
// kernel: clip_encode_image.1
= control target key start
LH: loop header
LB: loop body
LE: loop exit
PB: predicated region body
PF: predicated region fallthrough
CT: control target
= control target key end

     0   :  { %s4572_s27 = smov 0   ;;  %s4574_s28 = smov 0   ;;  %s5441_s0 = inlined_call_operand.vmem [shape: bf16[48,256], index: 0, kind: input, shape index: {}]   ;;  %s5442_s1 = inlined_call_operand.vmem [shape: f32[1,24], index: 1, kind: input, shape index: {}]   ;;  %s5443_s2 = inlined_call_operand.vmem [shape: bf16[256,128], index: 2, kind: input, shape index: {}]   ;;  %s5444_s3 = inlined_call_operand.vmem [shape: f32[48,128], index: 3, kind: input, shape index: {}]   ;;  %s5445_s4 = inlined_call_operand.vmem [shape: f32[1,128], index: 4, kind: input, shape index: {}]   ;;  %s5446_s5 = inlined_call_operand.vmem [shape: f32[1,128], index: 5, kind: input, shape index: {}]   ;;  %s5447_s6 = inlined_call_operand.vmem [shape: f32[2,1,128], index: 6, kind: input, shape index: {}]   ;;  %s5448_s7 = inlined_call_operand.vmem [shape: f32[2,1,128], index: 7, kind: input, shape index: {}]   ;;  %s5449_s8 = inlined_call_operand.vmem [shape: bf16[2,128,384], index: 8, kind: input, shape index: {}]   ;;  %s5450_s9 = inlined_call_operand.vmem [shape: f32[2,1,384], index: 9, kind: input, shape index: {}]   ;;  %s5451_s10 = inlined_call_operand.vmem [shape: bf16[2,128,128], index: 10, kind: input, shape index: {}]   ;;  %s5452_s11 = inlined_call_operand.vmem [shape: f32[2,1,128], index: 11, kind: input, shape index: {}]   ;;  %s5453_s12 = inlined_call_operand.vmem [shape: f32[2,1,128], index: 12, kind: input, shape index: {}]   ;;  %s5454_s13 = inlined_call_operand.vmem [shape: f32[2,1,128], index: 13, kind: input, shape index: {}]   ;;  %s5455_s14 = inlined_call_operand.vmem [shape: bf16[2,128,512], index: 14, kind: input, shape index: {}]   ;;  %s5456_s15 = inlined_call_operand.vmem [shape: f32[2,1,512], index: 15, kind: input, shape index: {}]   ;;  %s5457_s16 = inlined_call_operand.vmem [shape: bf16[2,512,128], index: 16, kind: input, shape index: {}]   ;;  %s5458_s17 = inlined_call_operand.vmem [shape: f32[2,1,128], index: 17, kind: input, shape index: {}]   ;;  %s5459_s18 = inlined_call_operand.vmem [shape: f32[48,128], index: 18, kind: output, shape index: {}]  }
   0x1   :  { %5466 = sst [smem:[#allocation5_spill]] %s5441_s0  ;;  %s4576_s29 = smov 0  }
   0x2   :  { %5467 = sst [smem:[#allocation6_spill]] %s5442_s1 }
   0x3   :  { %5468 = sst [smem:[#allocation7_spill]] %s5443_s2 }
   0x4   :  { %5469 = sst [smem:[#allocation8_spill]] %s5446_s5 }
   0x5   :  { %5470 = sst [smem:[#allocation9_spill]] %s5447_s6 }
   0x6   :  { %5471 = sst [smem:[#allocation10_spill]] %s5448_s7 }
   0x7   :  { %5472 = sst [smem:[#allocation11_spill]] %s5449_s8 }
   0x8   :  { %5473 = sst [smem:[#allocation12_spill]] %s5451_s10 }
   0x9   :  { %5474 = sst [smem:[#allocation13_spill]] %s5459_s18 }
   0xa LB: > { %5475 = sst [smem:[#allocation2_spill]] %s4467_s28  ;;  %s37_s30 = sadd.s32 1, %s4467_s28  ;;  %s4471_s29 = sphi %s4576_s29, %s28_s29   ;;  %s4467_s28 = sphi %s4574_s28, %s5497_s28   ;;  %s4463_s27 = sphi %s4572_s27, %s5496_s27  }
   0xb   : > { %5476 = sst [smem:[#allocation3_spill]] %s4471_s29  ;;  %p3585_p0 = scmp.ge.s32.totalorder %s4471_s29, 1 }
   0xc   : > { %p38_p1 = scmp.ge.s32.totalorder %s37_s30, 2  ;;  %p632_p2 = scmp.lt.s32.totalorder %s4471_s29, 3 }
   0xe   : > { %s5499_s30 = smov (%p38_p1, %s37_s30), 0  ;;  %p633_p3 = pnand %p3585_p0, %p632_p2 }
   0xf   : > { %5477 = sst [smem:[#allocation4_spill]] %s5499_s30  ;;  %p740_p4 = scmp.lt.s32.totalorder (!%p633_p3), %s4463_s27, 1 }
  0x10   : > { %636 = sbr.rel (%p633_p3) target bundleno = 4529 (0x11b1), region = 92  ;;  %s5480_s10 = sld [smem:[#allocation12_spill]] (!%p633_p3) }
  0x11   : > { %s5481_s8 = sld [smem:[#allocation11_spill]] (!%p633_p3)  ;;  %p3594_p5 = scmp.ne.s32.totalorder (!%p633_p3), %s4463_s27, 0 }
  0x15   : > { %s4594_s0 = scalar_select %p740_p4, %s4463_s27, 1 }
  0x16   : > { %s5485_s21 = sld [smem:[#allocation13_spill]] (!%p3594_p5) }
  0x17   : > { %s4073_s23 = smul.u32 192, %s4594_s0  ;;  %s3766_s24 = sshll.u32 %s4594_s0, 6 }
  0x18   : > { %s4074_s25 = smul.u32 3, %s4594_s0  ;;  %s4610_s1 = scalar_lea.vmem %s5480_s10, %s3766_s24 }
  0x19   : > { %s4615_s29 = scalar_lea.vmem %s5481_s8, %s4073_s23  ;;  %s3767_s28 = sshll.u32 %s4594_s0, 8 }
  0x1a   : > { %s4624_s2 = scalar_lea.vmem %s5450_s9, %s4074_s25  ;;  %s4638_s8 = scalar_lea.vmem %s5455_s14, %s3767_s28 }
  0x1b   : > { %s3591_s18 = sshll.u32 %s4594_s0, 2  ;;  %s4649_s5 = scalar_lea.vmem %s5457_s16, %s3767_s28 }
  0x1c   : > { %s4644_s25 = scalar_lea.vmem %s5456_s15, %s3591_s18  ;;  %s785_s19 = scalar_lea.vmem %s5458_s17, %s4594_s0 }
  0x1d   : > { %796 = sbr.rel (%p3594_p5) target bundleno = 586 (0x24a), region = 96  ;;  %s5482_s10 = sld [smem:[#allocation7_spill]] (!%p3594_p5) }
  0x1e   : > { %s5483_s24 = sld [smem:[#allocation5_spill]] (!%p3594_p5) }
  0x1f   : > { %s5484_s18 = sld [smem:[#allocation8_spill]] (!%p3594_p5) }
  0x22   : > { %v837_v26 = vld [vmem:[%s5444_s3 + $0x10] sm:$0xff]  ;;  %v835_v27 = vld [vmem:[%s5444_s3] sm:$0xff]  ;;  %v838_v36 = vld [vmem:[%s5444_s3 + $0x18] sm:$0xff] }
  0x23   : > { %v4103_v0 = vld [vmem:[%s5482_s10 + $0x78] sm:$0xff]   ;;  %v4105_v2 = vld [vmem:[%s5482_s10 + $0x70] sm:$0xff]   ;;  %v4107_v4 = vld [vmem:[%s5482_s10 + $0x68] sm:$0xff]  }
  0x24   : > { %v4104_v1 = vld [vmem:[%s5482_s10 + $0x38] sm:$0xff]   ;;  %3769 = vmatprep.subr.bf16.mxu0 %v4103_v0  ;;  %4045 = vmatprep.subr.bf16.mxu1 %v4103_v0  ;;  %v4106_v3 = vld [vmem:[%s5482_s10 + $0x30] sm:$0xff]   ;;  %v4108_v5 = vld [vmem:[%s5482_s10 + $0x28] sm:$0xff]  }
  0x25   : > { %3770 = vmatpush3.bf16.msra.mxu0 %v4104_v1  ;;  %4053 = vmatpush3.bf16.msra.mxu1 %v4104_v1  ;;  %v4109_v6 = vld [vmem:[%s5482_s10 + $0x60] sm:$0xff]   ;;  %v4111_v8 = vld [vmem:[%s5482_s10 + $0x58] sm:$0xff]   ;;  %v4113_v10 = vld [vmem:[%s5482_s10 + $0x50] sm:$0xff]  }
  0x26   : > { %3771 = vmatprep.subr.bf16.mxu0 %v4105_v2  ;;  %4046 = vmatprep.subr.bf16.mxu1 %v4105_v2  ;;  %v4110_v7 = vld [vmem:[%s5482_s10 + $0x20] sm:$0xff]   ;;  %v4112_v9 = vld [vmem:[%s5482_s10 + $0x18] sm:$0xff]   ;;  %v4114_v13 = vld [vmem:[%s5482_s10 + $0x10] sm:$0xff]  }
  0x27   : > { %v4121_v11 = vld [vmem:[%s5483_s24 + $0x4] ss:$8 sps:$4 sm:$0xff]   ;;  %v4124_v12 = vld [vmem:[%s5483_s24 + $0x14] ss:$8 sps:$4 sm:$0xff]   ;;  %v4119_v18 = vld [vmem:[%s5483_s24] ss:$8 sps:$4 sm:$0xff]  }
  0x28   : > { %v4115_v14 = vld [vmem:[%s5482_s10 + $0x48] sm:$0xff]   ;;  %999 = vmatprep.mubr.bf16.mxu0 %v4121_v11  ;;  %1007 = vmatprep.mubr.bf16.mxu1 %v4124_v12  ;;  %v4117_v16 = vld [vmem:[%s5482_s10 + $0x40] sm:$0xff]   ;;  %v4122_v19 = vld [vmem:[%s5483_s24 + $0x10] ss:$8 sps:$4 sm:$0xff]  }
  0x29   : > { %3772 = vmatpush3.bf16.msra.mxu0 %v4106_v3  ;;  %4054 = vmatpush3.bf16.msra.mxu1 %v4106_v3  ;;  %v4116_v15 = vld [vmem:[%s5482_s10 + $0x8] sm:$0xff]   ;;  %v4118_v17 = vld [vmem:[%s5482_s10] sm:$0xff]  }
  0x2a   : > { %3773 = vmatprep.subr.bf16.mxu0 %v4107_v4  ;;  %4047 = vmatprep.subr.bf16.mxu1 %v4107_v4  ;;  %v4125_v20 = vld [vmem:[%s5483_s24 + $0x24] ss:$8 sps:$4 sm:$0xff]   ;;  %v4127_v21 = vld [vmem:[%s5483_s24 + $0x20] ss:$8 sps:$4 sm:$0xff]  }
  0x2b   : > { %v836_v37 = vld [vmem:[%s5444_s3 + $0x8] sm:$0xff]  ;;  %v839_v44 = vld [vmem:[%s5444_s3 + $0x20] sm:$0xff] }
  0x2c   : > { %v840_v49 = vld [vmem:[%s5444_s3 + $0x28] sm:$0xff] }
  0x2d   : > { %3774 = vmatpush3.bf16.msra.mxu0 %v4108_v5  ;;  %4055 = vmatpush3.bf16.msra.mxu1 %v4108_v5 }
  0x2e   : > { %3775 = vmatprep.subr.bf16.mxu0 %v4109_v6  ;;  %4048 = vmatprep.subr.bf16.mxu1 %v4109_v6 }
  0x31   : > { %3776 = vmatpush3.bf16.msra.mxu0 %v4110_v7  ;;  %4056 = vmatpush3.bf16.msra.mxu1 %v4110_v7 }
  0x32   : > { %3777 = vmatprep.subr.bf16.mxu0 %v4111_v8  ;;  %4049 = vmatprep.subr.bf16.mxu1 %v4111_v8 }
  0x35   : > { %3778 = vmatpush3.bf16.msra.mxu0 %v4112_v9  ;;  %4057 = vmatpush3.bf16.msra.mxu1 %v4112_v9 }
  0x36   : > { %3779 = vmatprep.subr.bf16.mxu0 %v4113_v10  ;;  %4050 = vmatprep.subr.bf16.mxu1 %v4113_v10 }
  0x39   : > { %3780 = vmatpush3.bf16.msra.mxu0 %v4114_v13  ;;  %4058 = vmatpush3.bf16.msra.mxu1 %v4114_v13 }
  0x3a   : > { %3781 = vmatprep.subr.bf16.mxu0 %v4115_v14  ;;  %4051 = vmatprep.subr.bf16.mxu1 %v4115_v14 }
  0x3d   : > { %3782 = vmatpush3.bf16.msra.mxu0 %v4116_v15  ;;  %4059 = vmatpush3.bf16.msra.mxu1 %v4116_v15 }
  0x3e   : > { %3783 = vmatprep.subr.bf16.mxu0 %v4117_v16  ;;  %4052 = vmatprep.subr.bf16.mxu1 %v4117_v16 }
  0x41   : > { %3784 = vmatpush3.bf16.msra.mxu0 %v4118_v17  ;;  %4060 = vmatpush3.bf16.msra.mxu1 %v4118_v17 }
  0x44   : > { %1000 = vmatmul.mubr.bf16.vlgmr.msra.gmra.mxu0 %v4119_v18  ;;  %1008 = vmatmul.mubr.bf16.vlgmr.msra.gmra.mxu1 %v4122_v19 }
  0x45   : > { %1015 = vmatprep.mubr.bf16.mxu1 %v4125_v20 }
  0x4c   : > { %1016 = vmatmul.mubr.bf16.gmra.mxu1 %v4127_v21 }
 0x104   : > { %v3785_v22 = vpop.f32.mrf.mxu0  ;;  %v3791_v23 = vpop.f32.mrf.mxu1 }
 0x106   : > { %v3786_v24 = vpop.f32.mrf.mxu0  ;;  %v3792_v25 = vpop.f32.mrf.mxu1 }
 0x107   : > { %v3787_v28 = vadd.f32 %v3786_v24, %v3785_v22  ;;  %v3793_v29 = vadd.f32 %v3792_v25, %v3791_v23 }
 0x108   : > { %v3788_v30 = vpop.f32.mrf.mxu0  ;;  %v3794_v31 = vpop.f32.mrf.mxu1 }
 0x109   : > { %v1010_v32 = vadd.f32 %v3793_v29, %v837_v26  ;;  %v1002_v33 = vadd.f32 %v3787_v28, %v835_v27 }
 0x10a   : > { %v3789_v34 = vpop.f32.mrf.mxu0  ;;  %v3795_v35 = vpop.f32.mrf.mxu1 }
 0x10b   : > { %v3790_v38 = vadd.f32 %v3789_v34, %v3788_v30  ;;  %v3796_v39 = vadd.f32 %v3795_v35, %v3794_v31  ;;  %1030 = vadd.xlane.f32.xlu1 %v1010_v32  ;;  %1026 = vadd.xlane.f32.xlu0 %v1002_v33  ;;  %v3617_v31 = vld [vmem:[%s5445_s4] ss:$0 sm:$0xff] }
 0x10c   : > { %v3797_v40 = vpop.f32.mrf.mxu1 }
 0x10d   : > { %v1013_v41 = vadd.f32 %v3796_v39, %v838_v36  ;;  %v1005_v42 = vadd.f32 %v3790_v38, %v836_v37 }
 0x10e   : > { %v3798_v43 = vpop.f32.mrf.mxu1 }
 0x10f   : > { %v3799_v45 = vadd.f32 %v3798_v43, %v3797_v40  ;;  %1032 = vadd.xlane.f32.xlu1 %v1013_v41  ;;  %1028 = vadd.xlane.f32.xlu0 %v1005_v42 }
 0x110   : > { %v3800_v46 = vpop.f32.mrf.mxu1 }
 0x111   : > { %v1018_v47 = vadd.f32 %v3799_v45, %v839_v44 }
 0x112   : > { %v3801_v48 = vpop.f32.mrf.mxu1 }
 0x113   : > { %v3802_v50 = vadd.f32 %v3801_v48, %v3800_v46  ;;  %1034 = vadd.xlane.f32.xlu0 %v1018_v47 }
 0x115   : > { %v1021_v51 = vadd.f32 %v3802_v50, %v840_v49 }
 0x117   : > { %1036 = vadd.xlane.f32.xlu1 %v1021_v51 }
 0x194   : > { %v1031_v52 = vpop.xlane.xlu1 %1030  ;;  %v1027_v53 = vpop.xlane.xlu0 %1026 }
 0x195   : > { %v1041_v54 = vmul.f32 0.0078125, %v1031_v52  ;;  %v1039_v55 = vmul.f32 0.0078125, %v1027_v53 }
 0x197   : > { %v1045_v56 = vsub.f32 %v1002_v33, %v1039_v55  ;;  %v1047_v59 = vsub.f32 %v1010_v32, %v1041_v54  ;;  %v3618_v33 = vld [vmem:[%s5484_s18] ss:$0 sm:$0xff] }
 0x198   : > { %v1033_v57 = vpop.xlane.xlu1 %1032  ;;  %v1029_v58 = vpop.xlane.xlu0 %1028 }
 0x199   : > { %v1042_v60 = vmul.f32 0.0078125, %v1033_v57  ;;  %v1040_v61 = vmul.f32 0.0078125, %v1029_v58  ;;  %v1051_v62 = vmul.f32 %v1045_v56, %v1045_v56  ;;  %v1053_v3 = vmul.f32 %v1047_v59, %v1047_v59 }
 0x19b   : > { %v1046_v63 = vsub.f32 %v1005_v42, %v1040_v61  ;;  %1057 = vadd.xlane.f32.xlu0 %v1051_v62  ;;  %v1048_v1 = vsub.f32 %v1013_v41, %v1042_v60 }
 0x19c   : > { %v1035_v0 = vpop.xlane.xlu0 %1034 }
 0x19d   : > { %v1043_v2 = vmul.f32 0.0078125, %v1035_v0  ;;  %v1052_v4 = vmul.f32 %v1046_v63, %v1046_v63  ;;  %v1054_v8 = vmul.f32 %v1048_v1, %v1048_v1 }
 0x19f   : > { %v1049_v5 = vsub.f32 %v1018_v47, %v1043_v2  ;;  %1061 = vadd.xlane.f32.xlu0 %v1053_v3  ;;  %1059 = vadd.xlane.f32.xlu1 %v1052_v4 }
 0x1a0   : > { %v1037_v6 = vpop.xlane.xlu1 %1036 }
 0x1a1   : > { %v1044_v7 = vmul.f32 0.0078125, %v1037_v6  ;;  %v1055_v9 = vmul.f32 %v1049_v5, %v1049_v5 }
 0x1a3   : > { %v1050_v10 = vsub.f32 %v1021_v51, %v1044_v7  ;;  %1063 = vadd.xlane.f32.xlu1 %v1054_v8  ;;  %1065 = vadd.xlane.f32.xlu0 %v1055_v9 }
 0x1a5   : > { %v1056_v11 = vmul.f32 %v1050_v10, %v1050_v10 }
 0x1a7   : > { %1067 = vadd.xlane.f32.xlu1 %v1056_v11 }
 0x224   : > { %v1058_v12 = vpop.xlane.xlu0 %1057 }
 0x225   : > { %v1069_v13 = vmul.f32 0.0078125, %v1058_v12 }
 0x227   : > { %v1075_v14 = vadd.f32 1e-05, %v1069_v13 }
 0x228   : > { %v1060_v15 = vpop.xlane.xlu1 %1059  ;;  %v1062_v16 = vpop.xlane.xlu0 %1061 }
 0x229   : > { %4128 = vrsqrt.f32 %v1075_v14  ;;  %v1070_v17 = vmul.f32 0.0078125, %v1060_v15  ;;  %v1071_v18 = vmul.f32 0.0078125, %v1062_v16 }
 0x22b   : > { %v1076_v19 = vadd.f32 1e-05, %v1070_v17  ;;  %v1077_v20 = vadd.f32 1e-05, %v1071_v18 }
 0x22c   : > { %v1064_v21 = vpop.xlane.xlu1 %1063  ;;  %v1066_v22 = vpop.xlane.xlu0 %1065 }
 0x22d   : > { %4130 = vrsqrt.f32 %v1076_v19  ;;  %v1072_v23 = vmul.f32 0.0078125, %v1064_v21  ;;  %v1073_v24 = vmul.f32 0.0078125, %v1066_v22 }
 0x22e   : > { %4132 = vrsqrt.f32 %v1077_v20 }
 0x22f   : > { %v1078_v25 = vadd.f32 1e-05, %v1072_v23  ;;  %v1079_v26 = vadd.f32 1e-05, %v1073_v24 }
 0x230   : > { %v1068_v27 = vpop.xlane.xlu1 %1067 }
 0x231   : > { %4134 = vrsqrt.f32 %v1078_v25  ;;  %v1074_v28 = vmul.f32 0.0078125, %v1068_v27 }
 0x232   : > { %4136 = vrsqrt.f32 %v1079_v26 }
 0x233   : > { %v1080_v29 = vadd.f32 1e-05, %v1074_v28 }
 0x235   : > { %4138 = vrsqrt.f32 %v1080_v29 }
 0x236   : > { %v4129_v30 = vpop.eup %4128 }
 0x237   : > { %v1087_v32 = vmul.f32 %v4129_v30, %v1045_v56 }
 0x239   : > { %v1099_v34 = vmul.f32 %v3617_v31, %v1087_v32 }
 0x23a   : > { %v4131_v35 = vpop.eup %4130 }
 0x23b   : > { %v4133_v36 = vpop.eup %4132  ;;  %v1111_v37 = vadd.f32 %v3618_v33, %v1099_v34  ;;  %v1088_v38 = vmul.f32 %v4131_v35, %v1046_v63 }
 0x23c   : > { %v1089_v39 = vmul.f32 %v4133_v36, %v1047_v59 }
 0x23d   : > { %1117 = vst [vmem:[%s5485_s21] sm:$0xff] %v1111_v37  ;;  %v1100_v40 = vmul.f32 %v3617_v31, %v1088_v38 }
 0x23e   : > { %v4135_v41 = vpop.eup %4134  ;;  %v1101_v42 = vmul.f32 %v3617_v31, %v1089_v39 }
 0x23f   : > { %v4137_v43 = vpop.eup %4136  ;;  %v1112_v44 = vadd.f32 %v3618_v33, %v1100_v40  ;;  %v1090_v45 = vmul.f32 %v4135_v41, %v1048_v1 }
 0x240   : > { %v1113_v46 = vadd.f32 %v3618_v33, %v1101_v42  ;;  %v1091_v47 = vmul.f32 %v4137_v43, %v1049_v5 }
 0x241   : > { %1118 = vst [vmem:[%s5485_s21 + $0x8] sm:$0xff] %v1112_v44  ;;  %v1102_v48 = vmul.f32 %v3617_v31, %v1090_v45 }
 0x242   : > { %v4139_v49 = vpop.eup %4138  ;;  %1119 = vst [vmem:[%s5485_s21 + $0x10] sm:$0xff] %v1113_v46  ;;  %v1103_v50 = vmul.f32 %v3617_v31, %v1091_v47 }
 0x243   : > { %v1114_v51 = vadd.f32 %v3618_v33, %v1102_v48  ;;  %v1092_v52 = vmul.f32 %v4139_v49, %v1050_v10 }
 0x244   : > { %v1115_v53 = vadd.f32 %v3618_v33, %v1103_v50 }
 0x245   : > { %1120 = vst [vmem:[%s5485_s21 + $0x18] sm:$0xff] %v1114_v51  ;;  %v1104_v54 = vmul.f32 %v3617_v31, %v1092_v52 }
 0x246   : > { %1121 = vst [vmem:[%s5485_s21 + $0x20] sm:$0xff] %v1115_v53 }
 0x247   : > { %v1116_v55 = vadd.f32 %v3618_v33, %v1104_v54 }
 0x249   : > { %1122 = vst [vmem:[%s5485_s21 + $0x28] sm:$0xff] %v1116_v55 }
 0x24a PF: > { %s5486_s26 = sld [smem:[#allocation13_spill]]  ;;  %v4155_v60 = vld [vmem:[%s4615_s29 + $0xac] ss:$12 sps:$4 sm:$0xff]   ;;  %v4157_v61 = vld [vmem:[%s4615_s29 + $0xa8] ss:$12 sps:$4 sm:$0xff]   ;;  %v4473_v62 = vmov 0.0   ;;  %s5492_s7 = scalar_lea.vmem %s5452_s11, %s4594_s0 }
 0x24b   : > { %3925 = vmatprep.subr.bf16.mxu1 %v4473_v62  ;;  %v4158_v63 = vld [vmem:[%s4615_s29 + $0xb0] ss:$12 sps:$4 sm:$0xff]   ;;  %1402 = vmatprep.subr.bf16.mxu0 %v4155_v60  ;;  %v4159_v18 = vld [vmem:[%s4615_s29 + $0x94] ss:$12 sps:$4 sm:$0xff]   ;;  %v4162_v20 = vld [vmem:[%s4615_s29 + $0x98] ss:$12 sps:$4 sm:$0xff]   ;;  %s5494_s18 = scalar_lea.vmem %s5454_s13, %s4594_s0 }
 0x24c   : > { %1403 = vmatpush1.bf16.msra.mxu0 %v4157_v61  ;;  %3926 = vmatpush3.bf16.msra.mxu1 %v4158_v63  ;;  %v4161_v19 = vld [vmem:[%s4615_s29 + $0x90] ss:$12 sps:$4 sm:$0xff]   ;;  %v4165_v22 = vld [vmem:[%s4615_s29 + $0x78] ss:$12 sps:$4 sm:$0xff]   ;;  %v4166_v23 = vld [vmem:[%s4615_s29 + $0x80] ss:$12 sps:$4 sm:$0xff]  }
 0x24d   : > { %3927 = vmatprep.subr.bf16.mxu1 %v4473_v62  ;;  %1404 = vmatprep.subr.bf16.mxu0 %v4159_v18  ;;  %v4163_v21 = vld [vmem:[%s4615_s29 + $0x7c] ss:$12 sps:$4 sm:$0xff]   ;;  %v4167_v24 = vld [vmem:[%s4615_s29 + $0x64] ss:$12 sps:$4 sm:$0xff]   ;;  %v4169_v25 = vld [vmem:[%s4615_s29 + $0x60] ss:$12 sps:$4 sm:$0xff]  }
 0x24e   : > { %v4170_v26 = vld [vmem:[%s4615_s29 + $0x68] ss:$12 sps:$4 sm:$0xff]   ;;  %v4171_v27 = vld [vmem:[%s4615_s29 + $0x4c] ss:$12 sps:$4 sm:$0xff]   ;;  %v4174_v29 = vld [vmem:[%s4615_s29 + $0x50] ss:$12 sps:$4 sm:$0xff]  }
 0x24f   : > { %v4173_v28 = vld [vmem:[%s4615_s29 + $0x48] ss:$12 sps:$4 sm:$0xff]   ;;  %v4177_v31 = vld [vmem:[%s4615_s29 + $0x30] ss:$12 sps:$4 sm:$0xff]   ;;  %v4178_v32 = vld [vmem:[%s4615_s29 + $0x38] ss:$12 sps:$4 sm:$0xff]  }
 0x250   : > { %v1123_v56 = vld [vmem:[%s5486_s26] sm:$0xff]  ;;  %v1125_v57 = vld [vmem:[%s5486_s26 + $0x10] sm:$0xff]  ;;  %v1124_v58 = vld [vmem:[%s5486_s26 + $0x8] sm:$0xff]  ;;  %1405 = vmatpush1.bf16.msra.mxu0 %v4161_v19  ;;  %3928 = vmatpush3.bf16.msra.mxu1 %v4162_v20  ;;  %v4474_v37 = vmov 0   ;;  %vm4475_vm0 = vmmov 0   ;;  %s5487_s30 = sld [smem:[#allocation9_spill]] }
 0x251   : > { %1131 = vadd.xlane.f32.xlu0 %v1123_v56  ;;  %1135 = vadd.xlane.f32.xlu1 %v1125_v57  ;;  %v1126_v59 = vld [vmem:[%s5486_s26 + $0x18] sm:$0xff]  ;;  %v4800_v16 = vld [vmem:[%s5486_s26 + $0x20] sm:$0xff]  ;;  %v4806_v17 = vld [vmem:[%s5486_s26 + $0x28] sm:$0xff]  ;;  %s5489_s21 = sld [smem:[#allocation10_spill]]  ;;  %vm1538_vm1 = vcmask 523264   ;;  %vm1641_vm2 = vcmask 1043456  }
 0x252   : > { %3929 = vmatprep.subr.bf16.mxu1 %v4473_v62  ;;  %1406 = vmatprep.subr.bf16.mxu0 %v4163_v21  ;;  %v4175_v30 = vld [vmem:[%s4615_s29 + $0x34] ss:$12 sps:$4 sm:$0xff]   ;;  %v4179_v33 = vld [vmem:[%s4615_s29 + $0x1c] ss:$12 sps:$4 sm:$0xff]   ;;  %v4181_v34 = vld [vmem:[%s4615_s29 + $0x18] ss:$12 sps:$4 sm:$0xff]  }
 0x253   : > { %v4182_v35 = vld [vmem:[%s4615_s29 + $0x20] ss:$12 sps:$4 sm:$0xff]   ;;  %v4183_v36 = vld [vmem:[%s4615_s29 + $0x4] ss:$12 sps:$4 sm:$0xff]   ;;  %1434 = vmatprep.mubr.bf16.mxu0 %v4474_v37  ;;  %3941 = vmatprep.mubr.msk.bf16.mxu1 %vm4475_vm0, %v4473_v62  ;;  %v4186_v39 = vld [vmem:[%s4615_s29 + $0x8] ss:$12 sps:$4 sm:$0xff]  }
 0x254   : > { %1407 = vmatpush1.bf16.msra.mxu0 %v4165_v22  ;;  %3930 = vmatpush3.bf16.msra.mxu1 %v4166_v23  ;;  %v4185_v38 = vld [vmem:[%s4615_s29] ss:$12 sps:$4 sm:$0xff]   ;;  %s5491_s27 = sld [smem:[#allocation6_spill]]  ;;  %vm1599_vm3 = vcmask 195584   ;;  %s4476_s22 = smov 64  }
 0x255   : > { %1133 = vadd.xlane.f32.xlu0 %v1124_v58  ;;  %1137 = vadd.xlane.f32.xlu1 %v1126_v59 }
 0x256   : > { %3931 = vmatprep.subr.bf16.mxu1 %v4473_v62  ;;  %1408 = vmatprep.subr.bf16.mxu0 %v4167_v24  ;;  %s5488_s23 = scalar_lea.vmem %s5487_s30, %s4594_s0  ;;  %s5493_s30 = scalar_lea.vmem %s5453_s12, %s4594_s0 }
 0x257   : > { %v3619_v63 = vld [vmem:[%s5488_s23] ss:$0 sm:$0xff]  ;;  %s5490_s28 = scalar_lea.vmem %s5489_s21, %s4594_s0 }
 0x258   : > { %1409 = vmatpush1.bf16.msra.mxu0 %v4169_v25  ;;  %3932 = vmatpush3.bf16.msra.mxu1 %v4170_v26 }
 0x259   : > { %3933 = vmatprep.subr.bf16.mxu1 %v4473_v62  ;;  %1410 = vmatprep.subr.bf16.mxu0 %v4171_v27 }
 0x25c   : > { %1411 = vmatpush1.bf16.msra.mxu0 %v4173_v28  ;;  %3934 = vmatpush3.bf16.msra.mxu1 %v4174_v29 }
 0x25d   : > { %1412 = vmatprep.subr.bf16.mxu0 %v4175_v30  ;;  %3935 = vmatprep.subr.bf16.mxu1 %v4473_v62 }
 0x260   : > { %1413 = vmatpush1.bf16.msra.mxu0 %v4177_v31  ;;  %3936 = vmatpush3.bf16.msra.mxu1 %v4178_v32  ;;  %v1259_v32 = vlaneseq }
 0x261   : > { %1414 = vmatprep.subr.bf16.mxu0 %v4179_v33  ;;  %3937 = vmatprep.subr.bf16.mxu1 %v4473_v62 }
 0x262   : > { %v4861_v33 = vshrl.u32 %v1259_v32, 7 }
 0x264   : > { %1415 = vmatpush1.bf16.msra.mxu0 %v4181_v34  ;;  %3938 = vmatpush3.bf16.msra.mxu1 %v4182_v35  ;;  %v1261_v34 = vsub.s32 0, %v4861_v33  ;;  %v1257_v35 = vld [vmem:[%s4624_s2] sm:$0x7] }
 0x265   : > { %1416 = vmatprep.subr.bf16.mxu0 %v4183_v36  ;;  %3939 = vmatprep.subr.bf16.mxu1 %v4473_v62 }
 0x268   : > { %1417 = vmatpush1.bf16.msra.mxu0 %v4185_v38  ;;  %3940 = vmatpush3.bf16.msra.mxu1 %v4186_v39  ;;  %v1262_v39 = vrot.slane %v1257_v35, %v1261_v34 }
 0x2da   : > { %v1132_v0 = vpop.xlane.xlu0 %1131  ;;  %v1136_v1 = vpop.xlane.xlu1 %1135 }
 0x2db   : > { %v1144_v2 = vmul.f32 0.0078125, %v1132_v0  ;;  %v1146_v3 = vmul.f32 0.0078125, %v1136_v1 }
 0x2dd   : > { %v4781_v4 = vsub.f32 %v1123_v56, %v1144_v2  ;;  %v4783_v5 = vsub.f32 %v1125_v57, %v1146_v3 }
 0x2de   : > { %v1134_v6 = vpop.xlane.xlu0 %1133  ;;  %v1138_v7 = vpop.xlane.xlu1 %1137 }
 0x2df   : > { %v1145_v8 = vmul.f32 0.0078125, %v1134_v6  ;;  %v1156_v9 = vmul.f32 %v4781_v4, %v4781_v4  ;;  %v1147_v10 = vmul.f32 0.0078125, %v1138_v7  ;;  %v1158_v13 = vmul.f32 %v4783_v5, %v4783_v5  ;;  %v3620_v6 = vld [vmem:[%s5490_s28] ss:$0 sm:$0xff] }
 0x2e1   : > { %v4787_v11 = vsub.f32 %v1124_v58, %v1145_v8  ;;  %1162 = vadd.xlane.f32.xlu0 %v1156_v9  ;;  %v4789_v12 = vsub.f32 %v1126_v59, %v1147_v10 }
 0x2e3   : > { %v1157_v14 = vmul.f32 %v4787_v11, %v4787_v11  ;;  %v1159_v15 = vmul.f32 %v4789_v12, %v4789_v12 }
 0x2e5   : > { %1166 = vadd.xlane.f32.xlu0 %v1158_v13  ;;  %1164 = vadd.xlane.f32.xlu1 %v1157_v14 }
 0x2e9   : > { %1139 = vadd.xlane.f32.xlu0 %v4800_v16  ;;  %1168 = vadd.xlane.f32.xlu1 %v1159_v15 }
 0x2ed   : > { %1141 = vadd.xlane.f32.xlu1 %v4806_v17 }
 0x36a   : > { %v1163_v40 = vpop.xlane.xlu0 %1162 }
 0x36b   : > { %v1174_v41 = vmul.f32 0.0078125, %v1163_v40 }
 0x36d   : > { %v1180_v42 = vadd.f32 1e-05, %v1174_v41 }
 0x36e   : > { %v1165_v43 = vpop.xlane.xlu1 %1164  ;;  %v1167_v44 = vpop.xlane.xlu0 %1166 }
 0x36f   : > { %4275 = vrsqrt.f32 %v1180_v42  ;;  %v1175_v45 = vmul.f32 0.0078125, %v1165_v43  ;;  %v1176_v46 = vmul.f32 0.0078125, %v1167_v44 }
 0x371   : > { %v1181_v47 = vadd.f32 1e-05, %v1175_v45  ;;  %v1182_v48 = vadd.f32 1e-05, %v1176_v46 }
 0x372   : > { %v1169_v49 = vpop.xlane.xlu1 %1168  ;;  %v1140_v50 = vpop.xlane.xlu0 %1139 }
 0x373   : > { %4277 = vrsqrt.f32 %v1181_v47  ;;  %v1177_v51 = vmul.f32 0.0078125, %v1169_v49  ;;  %v1148_v52 = vmul.f32 0.0078125, %v1140_v50 }
 0x374   : > { %4279 = vrsqrt.f32 %v1182_v48 }
 0x375   : > { %v1183_v53 = vadd.f32 1e-05, %v1177_v51  ;;  %v1154_v54 = vsub.f32 %v4800_v16, %v1148_v52  ;;  %v1265_v51 = vsub.s32 1, %v4861_v33 }
 0x376   : > { %v1142_v55 = vpop.xlane.xlu1 %1141 }
 0x377   : > { %4281 = vrsqrt.f32 %v1183_v53  ;;  %v1149_v56 = vmul.f32 0.0078125, %v1142_v55  ;;  %v1160_v57 = vmul.f32 %v1154_v54, %v1154_v54 }
 0x379   : > { %v1155_v58 = vsub.f32 %v4806_v17, %v1149_v56  ;;  %1170 = vadd.xlane.f32.xlu0 %v1160_v57  ;;  %v4874_v56 = vrot.slane %v1257_v35, %v1265_v51 }
 0x37b   : > { %v1161_v59 = vmul.f32 %v1155_v58, %v1155_v58 }
 0x37c   : > { %v4276_v60 = vpop.eup %4275 }
 0x37d   : > { %1172 = vadd.xlane.f32.xlu1 %v1161_v59  ;;  %v1192_v61 = vmul.f32 %v4276_v60, %v4781_v4 }
 0x37f   : > { %v1204_v2 = vmul.f32 %v3619_v63, %v1192_v61 }
 0x380   : > { %v4278_v0 = vpop.eup %4277 }
 0x381   : > { %v1193_v1 = vmul.f32 %v4278_v0, %v4787_v11  ;;  %v4280_v3 = vpop.eup %4279  ;;  %v1216_v9 = vadd.f32 %v3620_v6, %v1204_v2 }
 0x382   : > { %v1194_v4 = vmul.f32 %v4280_v3, %v4783_v5 }
 0x383   : > { %v1205_v7 = vmul.f32 %v3619_v63, %v1193_v1 }
 0x384   : > { %v4282_v8 = vpop.eup %4281  ;;  %v1206_v11 = vmul.f32 %v3619_v63, %v1194_v4 }
 0x385   : > { %v1217_v10 = vadd.f32 %v3620_v6, %v1205_v7  ;;  %v1195_v13 = vmul.f32 %v4282_v8, %v4789_v12 }
 0x386   : > { %v1218_v17 = vadd.f32 %v3620_v6, %v1206_v11 }
 0x387   : > { %v1222_v14 = vpack.c.bf16 %v1217_v10, %v1216_v9  ;;  %v1207_v15 = vmul.f32 %v3619_v63, %v1195_v13 }
 0x389   : > { %1435 = vmatmul.mubr.bf16.vlgmr.msra.gmra.mxu0 %v1222_v14  ;;  %3942 = vmatmul.mubr.bf16.vlgmr.msra.gmra.mxu1 %v1222_v14  ;;  %v1219_v16 = vadd.f32 %v3620_v6, %v1207_v15 }
 0x38a   : > { %1444 = vmatprep.mubr.bf16.mxu0 %v4474_v37  ;;  %3945 = vmatprep.mubr.msk.bf16.mxu1 %vm4475_vm0, %v4473_v62 }
 0x38b   : > { %v1223_v18 = vpack.c.bf16 %v1219_v16, %v1218_v17 }
 0x391   : > { %1445 = vmatmul.mubr.bf16.gmra.mxu0 %v1223_v18  ;;  %3946 = vmatmul.mubr.bf16.gmra.mxu1 %v1223_v18 }
 0x392   : > { %1454 = vmatprep.mubr.bf16.mxu0 %v4474_v37  ;;  %3949 = vmatprep.mubr.msk.bf16.mxu1 %vm4475_vm0, %v4473_v62 }
 0x402   : > { %v1171_v5 = vpop.xlane.xlu0 %1170 }
 0x403   : > { %v1178_v12 = vmul.f32 0.0078125, %v1171_v5 }
 0x405   : > { %v1184_v19 = vadd.f32 1e-05, %v1178_v12 }
 0x406   : > { %v1173_v20 = vpop.xlane.xlu1 %1172 }
 0x407   : > { %4283 = vrsqrt.f32 %v1184_v19  ;;  %v1179_v21 = vmul.f32 0.0078125, %v1173_v20 }
 0x409   : > { %v1185_v22 = vadd.f32 1e-05, %v1179_v21 }
 0x40b   : > { %4285 = vrsqrt.f32 %v1185_v22 }
 0x414   : > { %v4284_v23 = vpop.eup %4283 }
 0x415   : > { %v1196_v24 = vmul.f32 %v4284_v23, %v1154_v54 }
 0x417   : > { %v1208_v27 = vmul.f32 %v3619_v63, %v1196_v24 }
 0x418   : > { %v4286_v25 = vpop.eup %4285 }
 0x419   : > { %v1197_v26 = vmul.f32 %v4286_v25, %v1155_v58  ;;  %v1220_v29 = vadd.f32 %v3620_v6, %v1208_v27 }
 0x41b   : > { %v1209_v28 = vmul.f32 %v3619_v63, %v1197_v26  ;;  %v1269_v63 = vsub.s32 2, %v4861_v33 }
 0x41d   : > { %v1221_v30 = vadd.f32 %v3620_v6, %v1209_v28  ;;  %v1270_v6 = vrot.slane %v1257_v35, %v1269_v63 }
 0x41f   : > { %v1224_v31 = vpack.c.bf16 %v1221_v30, %v1220_v29 }
 0x421   : > { %1455 = vmatmul.mubr.bf16.gmra.mxu0 %v1224_v31  ;;  %3950 = vmatmul.mubr.bf16.gmra.mxu1 %v1224_v31  ;;  %v4928_v31 = vld [vmem:[%s5491_s27] ss:$0 sm:$0xff] }
 0x449   : > { %v1436_v36 = vpop.f32.mrf.mxu0  ;;  %v1499_v38 = vpop.f32.mrf.mxu1 }
 0x44a   : > { %v1437_v44 = vadd.f32 %v1436_v36, %v1262_v39  ;;  %v1500_v15 = vadd.f32 %v1499_v38, %v1270_v6 }
 0x44b   : > { %v1438_v40 = vpop.f32.mrf.mxu0  ;;  %v3943_v41 = vpop.f32.mrf.mxu1 }
 0x44c   : > { %v1439_v0 = vadd.f32 %v1438_v40, %v4874_v56 }
 0x44d   : > { %v1440_v42 = vpop.f32.mrf.mxu0  ;;  %v1502_v43 = vpop.f32.mrf.mxu1 }
 0x44e   : > { %v1441_v45 = vadd.f32 %v1440_v42, %v1262_v39  ;;  %v1503_v13 = vadd.f32 %v1502_v43, %v1270_v6 }
 0x44f   : > { %v1442_v46 = vpop.f32.mrf.mxu0  ;;  %v3944_v47 = vpop.f32.mrf.mxu1 }
 0x450   : > { %v4867_v48 = vpack.c.bf16 %v1441_v45, %v1437_v44  ;;  %v1443_v59 = vadd.f32 %v1442_v46, %v4874_v56  ;;  %v4901_v16 = vpack.c.bf16 %v1503_v13, %v1500_v15 }
 0x451   : > { %v1446_v49 = vpop.f32.mrf.mxu0  ;;  %v1507_v50 = vpop.f32.mrf.mxu1 }
 0x452   : > { %3957 = vmatprep.mubr.msk.bf16.mxu0 %vm1538_vm1, %v4867_v48  ;;  %v4883_v2 = vpack.c.bf16 %v1443_v59, %v1439_v0  ;;  %v1508_v8 = vadd.f32 %v1507_v50, %v1270_v6  ;;  %v1447_v14 = vadd.f32 %v1446_v49, %v1262_v39 }
 0x453   : > { %v1448_v52 = vpop.f32.mrf.mxu0  ;;  %v3947_v53 = vpop.f32.mrf.mxu1 }
 0x454   : > { %v1449_v60 = vadd.f32 %v1448_v52, %v4874_v56  ;;  %v1546_v10 = vsel %vm1538_vm1, %v4883_v2, 0 }
 0x455   : > { %v1450_v54 = vpop.f32.mrf.mxu0  ;;  %v1510_v55 = vpop.f32.mrf.mxu1 }
 0x456   : > { %v1511_v7 = vadd.f32 %v1510_v55, %v1270_v6  ;;  %v1451_v4 = vadd.f32 %v1450_v54, %v1262_v39 }
 0x457   : > { %v1452_v57 = vpop.f32.mrf.mxu0  ;;  %v3948_v58 = vpop.f32.mrf.mxu1 }
 0x458   : > { %v1453_v61 = vadd.f32 %v1452_v57, %v4874_v56  ;;  %v4893_v9 = vpack.c.bf16 %v1511_v7, %v1508_v8  ;;  %v4899_v11 = vpack.c.bf16 %v1451_v4, %v1447_v14 }
 0x45a   : > { %v4881_v1 = vpack.c.bf16 %v1453_v61, %v1449_v60  ;;  %v1643_v17 = vsel %vm1641_vm2, %v4893_v9, 0 }
 0x45c   : > { %4061 = vmatprep.subr.msk.bf16.mxu0 %vm1538_vm1, %v4881_v1  ;;  %v1549_v3 = vsel %vm1538_vm1, %v4881_v1, 0 }
 0x45d   : > { %3954 = vmatpush3.bf16.xpose.msra.mxu0 %v1549_v3 }
 0x45e   : > { %4062 = vmatprep.subr.msk.bf16.mxu0 %vm1538_vm1, %v4883_v2 }
 0x465   : > { %3956 = vmatpush3.bf16.xpose.msra.mxu0 %v1546_v10 }
 0x466   : > { %4063 = vmatprep.subr.msk.bf16.mxu0 %vm1641_vm2, %v4893_v9 }
 0x46c   : > { %3958 = vmatmul.mubr.msk.bf16.vlgmr.msra.gmra.mxu0 %vm1538_vm1, %v4899_v11 }
 0x46d   : > { %3962 = vmatpush3.bf16.msra.mxu0 %v1643_v17 }
 0x46e   : > { %3963 = vmatprep.subr.bf16.mxu0 %v4901_v16 }
 0x471   : > { %3964 = vmatpush3.bf16.msra.mxu0 %v4901_v16 }
 0x4e1   : > { %v1456_v18 = vpop.f32.mrf.mxu0  ;;  %v1515_v5 = vpop.f32.mrf.mxu1 }
 0x4e2   : > { %v4911_v22 = vadd.f32 %v1456_v18, %v1262_v39  ;;  %v4913_v23 = vadd.f32 %v1515_v5, %v1270_v6 }
 0x4e3   : > { %v4909_v12 = vpop.f32.mrf.mxu0  ;;  %v3951_v19 = vpop.f32.mrf.mxu1 }
 0x4e5   : > { %v1460_v20 = vpop.f32.mrf.mxu0  ;;  %v1518_v21 = vpop.f32.mrf.mxu1 }
 0x4e6   : > { %v4915_v24 = vadd.f32 %v1460_v20, %v1262_v39  ;;  %v4917_v25 = vadd.f32 %v1518_v21, %v1270_v6 }
 0x4e7   : > { %v3952_v26 = vpop.f32.mrf.mxu1  ;;  %v4923_v29 = vpop.f32.mrf.mxu0 }
 0x4e8   : > { %v1528_v27 = vpack.c.bf16 %v4915_v24, %v4911_v22  ;;  %v1530_v28 = vpack.c.bf16 %v4917_v25, %v4913_v23  ;;  %v1984_v26 = vrot.slane %v4893_v9, 4 }
 0x4ea   : > { %v4956_v19 = vrot.slane %v1530_v28, 4 }
 0x4ec   : > { %v4967_v23 = vsel %vm1641_vm2, %v1984_v26, %v4956_v19 }
 0x52c   : > { %v3959_v30 = vpop.f32.mrf.mxu0 }
 0x52d   : > { %v1594_v38 = vadd.f32 %v3959_v30, %v4928_v31  ;;  %v1995_v30 = vsel %vm1641_vm2, %v4956_v19, 0 }
 0x52e   : > { %v1585_v32 = vpop.f32.mrf.mxu0 }
 0x52f   : > { %v1586_v35 = vadd.f32 %v4928_v31, %v1585_v32  ;;  %v1606_v43 = vsel %vm1599_vm3, %v1594_v38, -inf }
 0x530   : > { %v3960_v36 = vpop.f32.mrf.mxu0 }
 0x531   : > { %v1600_v39 = vsel %vm1599_vm3, %v1586_v35, -inf }
 0x532   : > { %v1588_v40 = vpop.f32.mrf.mxu0  ;;  %1601 = vmax.xlane.f32.xlu0 %v1600_v39 }
 0x533   : > { %v1589_v41 = vadd.f32 %v4928_v31, %v1588_v40 }
 0x535   : > { %v1603_v42 = vsel %vm1599_vm3, %v1589_v41, -inf }
 0x536   : > { %1604 = vmax.xlane.f32.xlu1 %v1603_v42  ;;  %1607 = vmax.xlane.f32.xlu0 %v1606_v43 }
 0x5bb   : > { %v1602_v44 = vpop.xlane.xlu0 %1601 }
 0x5bc   : > { %v1609_v45 = vsub.f32 %v1586_v35, %v1602_v44 }
 0x5be   : > { %v1612_v46 = vmul.f32 1.442695, %v1609_v45 }
 0x5bf   : > { %v1605_v47 = vpop.xlane.xlu1 %1604  ;;  %v1608_v49 = vpop.xlane.xlu0 %1607 }
 0x5c0   : > { %4287 = vpow2.f32 %v1612_v46  ;;  %v1610_v50 = vsub.f32 %v1589_v41, %v1605_v47  ;;  %v1611_v52 = vsub.f32 %v1594_v38, %v1608_v49 }
 0x5c2   : > { %v1614_v53 = vmul.f32 1.442695, %v1610_v50  ;;  %v1616_v54 = vmul.f32 1.442695, %v1611_v52 }
 0x5c4   : > { %4289 = vpow2.f32 %v1614_v53 }
 0x5c5   : > { %4291 = vpow2.f32 %v1616_v54 }
 0x5cd   : > { %v4288_v55 = vpop.eup %4287 }
 0x5ce   : > { %v1618_v57 = vsel %vm1599_vm3, %v4288_v55, 0.0 }
 0x5cf   : > { %1619 = vadd.xlane.f32.xlu1 %v1618_v57 }
 0x5d1   : > { %v4290_v58 = vpop.eup %4289 }
 0x5d2   : > { %v4292_v59 = vpop.eup %4291  ;;  %v1621_v60 = vsel %vm1599_vm3, %v4290_v58, 0.0 }
 0x5d3   : > { %1622 = vadd.xlane.f32.xlu0 %v1621_v60  ;;  %v1624_v61 = vsel %vm1599_vm3, %v4292_v59, 0.0 }
 0x5d4   : > { %1625 = vadd.xlane.f32.xlu1 %v1624_v61 }
 0x5e5   : > { %1701 = vrot.lane.b32.xlu1 %v4883_v2, %s4476_s22 }
 0x5e9   : > { %1695 = vrot.lane.b32.xlu1 %v4867_v48, %s4476_s22  ;;  %1703 = vrot.lane.b32.xlu0 %v4881_v1, %s4476_s22 }
 0x5ed   : > { %1697 = vrot.lane.b32.xlu1 %v4899_v11, %s4476_s22 }
 0x658   : > { %v1620_v0 = vpop.xlane.xlu1 %1619 }
 0x659   : > { %4293 = vrcp.f32 %v1620_v0 }
 0x65c   : > { %v1623_v3 = vpop.xlane.xlu0 %1622 }
 0x65d   : > { %v1626_v6 = vpop.xlane.xlu1 %1625  ;;  %4295 = vrcp.f32 %v1623_v3 }
 0x65e   : > { %4297 = vrcp.f32 %v1626_v6 }
 0x660   : > { %v1704_v7 = vpop.permute.xlu0 %1703 }
 0x661   : > { %4064 = vmatprep.subr.msk.bf16.mxu0 %vm1538_vm1, %v1704_v7  ;;  %v1702_v10 = vpop.permute.xlu1 %1701  ;;  %v1715_v18 = vsel %vm1538_vm1, %v1704_v7, 0 }
 0x662   : > { %v1712_v20 = vsel %vm1538_vm1, %v1702_v10, 0 }
 0x665   : > { %v1696_v5 = vpop.permute.xlu1 %1695 }
 0x666   : > { %v4294_v8 = vpop.eup %4293 }
 0x667   : > { %v1628_v48 = vmul.f32 %v4294_v8, %v4288_v55 }
 0x669   : > { %v1698_v21 = vpop.permute.xlu1 %1697 }
 0x66a   : > { %v4296_v2 = vpop.eup %4295 }
 0x66b   : > { %v4298_v4 = vpop.eup %4297  ;;  %v1630_v13 = vmul.f32 %v4296_v2, %v4290_v58  ;;  %v1463_v2 = vadd.f32 %v4923_v29, %v4874_v56 }
 0x66c   : > { %v1632_v14 = vmul.f32 %v4298_v4, %v4292_v59  ;;  %v1459_v4 = vadd.f32 %v4909_v12, %v4874_v56  ;;  %v1882_v12 = vrot.slane %v1528_v27, 4 }
 0x66d   : > { %v1633_v15 = vpack.c.bf16 %v1630_v13, %v1628_v48 }
 0x66e   : > { %v1634_v17 = vpack.c.bf16 %v1632_v14, %v1632_v14  ;;  %v1529_v13 = vpack.c.bf16 %v1463_v2, %v1459_v4 }
 0x66f   : > { %3965 = vmatprep.mubr.msk.bf16.mxu0 %vm1599_vm3, %v1633_v15 }
 0x670   : > { %3966 = vmatmul.mubr.msk.bf16.vlgmr.msra.gmra.mxu0 %vm1599_vm3, %v1634_v17 }
 0x671   : > { %3970 = vmatpush3.bf16.xpose.msra.mxu0 %v1715_v18  ;;  %3973 = vmatprep.mubr.msk.bf16.mxu0 %vm1538_vm1, %v1696_v5 }
 0x672   : > { %4065 = vmatprep.subr.msk.bf16.mxu0 %vm1538_vm1, %v1702_v10 }
 0x679   : > { %3972 = vmatpush3.bf16.xpose.msra.mxu0 %v1712_v20 }
 0x67a   : > { %4069 = vmatprep.subr.msk.bf16.mxu0 %vm1641_vm2, %v4956_v19 }
 0x680   : > { %3974 = vmatmul.mubr.msk.bf16.vlgmr.msra.gmra.mxu0 %vm1538_vm1, %v1698_v21  ;;  %v1881_v21 = vrot.slane %v4899_v11, 4 }
 0x681   : > { %3994 = vmatpush3.bf16.msra.mxu0 %v1995_v30  ;;  %v1885_v30 = vrot.slane %v4881_v1, 4 }
 0x682   : > { %3995 = vmatprep.subr.bf16.mxu0 %v4967_v23 }
 0x685   : > { %3996 = vmatpush3.bf16.msra.mxu0 %v4967_v23 }
 0x730   : > { %v4971_v25 = vpop.f32.mrf.mxu0 }
 0x732   : > { %v4973_v28 = vpop.f32.mrf.mxu0 }
 0x734   : > { %v3968_v32 = vpop.f32.mrf.mxu0 }
 0x736   : > { %v4975_v35 = vpop.f32.mrf.mxu0 }
 0x740   : > { %v3975_v36 = vpop.f32.mrf.mxu0 }
 0x741   : > { %v1760_v41 = vadd.f32 %v3975_v36, %v4928_v31  ;;  %v1883_v36 = vsel %vm1641_vm2, %v1881_v21, %v1882_v12 }
 0x742   : > { %v1751_v38 = vpop.f32.mrf.mxu0 }
 0x743   : > { %v1752_v39 = vadd.f32 %v4928_v31, %v1751_v38  ;;  %v1771_v46 = vsel %vm1599_vm3, %v1760_v41, -inf }
 0x744   : > { %v3976_v40 = vpop.f32.mrf.mxu0 }
 0x745   : > { %v1765_v42 = vsel %vm1599_vm3, %v1752_v39, -inf }
 0x746   : > { %v1754_v43 = vpop.f32.mrf.mxu0  ;;  %1766 = vmax.xlane.f32.xlu0 %v1765_v42 }
 0x747   : > { %v1755_v44 = vadd.f32 %v4928_v31, %v1754_v43 }
 0x749   : > { %v1768_v45 = vsel %vm1599_vm3, %v1755_v44, -inf }
 0x74a   : > { %1769 = vmax.xlane.f32.xlu1 %v1768_v45  ;;  %1772 = vmax.xlane.f32.xlu0 %v1771_v46 }
 0x7cf   : > { %v1767_v47 = vpop.xlane.xlu0 %1766 }
 0x7d0   : > { %v1774_v49 = vsub.f32 %v1752_v39, %v1767_v47 }
 0x7d2   : > { %v1777_v50 = vmul.f32 1.442695, %v1774_v49 }
 0x7d3   : > { %v1770_v52 = vpop.xlane.xlu1 %1769  ;;  %v1773_v53 = vpop.xlane.xlu0 %1772 }
 0x7d4   : > { %4299 = vpow2.f32 %v1777_v50  ;;  %v1775_v54 = vsub.f32 %v1755_v44, %v1770_v52  ;;  %v1776_v55 = vsub.f32 %v1760_v41, %v1773_v53 }
 0x7d6   : > { %v1779_v57 = vmul.f32 1.442695, %v1775_v54  ;;  %v1781_v58 = vmul.f32 1.442695, %v1776_v55 }
 0x7d8   : > { %4301 = vpow2.f32 %v1779_v57 }
 0x7d9   : > { %4303 = vpow2.f32 %v1781_v58 }
 0x7e1   : > { %v4300_v59 = vpop.eup %4299 }
 0x7e2   : > { %v1783_v60 = vsel %vm1599_vm3, %v4300_v59, 0.0 }
 0x7e3   : > { %1784 = vadd.xlane.f32.xlu0 %v1783_v60 }
 0x7e5   : > { %v4302_v61 = vpop.eup %4301 }
 0x7e6   : > { %v4304_v0 = vpop.eup %4303  ;;  %v1786_v3 = vsel %vm1599_vm3, %v4302_v61, 0.0 }
 0x7e7   : > { %1787 = vadd.xlane.f32.xlu0 %v1786_v3  ;;  %v1789_v6 = vsel %vm1599_vm3, %v4304_v0, 0.0 }
 0x7e8   : > { %1790 = vadd.xlane.f32.xlu1 %v1789_v6 }
 0x7f9   : > { %1802 = vrot.lane.b32.xlu1 %v4901_v16, %s4476_s22 }
 0x7fd   : > { %1804 = vrot.lane.b32.xlu0 %v4893_v9, %s4476_s22  ;;  %v4996_v9 = vrot.slane %v1529_v13, 4 }
 0x7ff   : > { %v1898_v32 = vsel %vm1538_vm1, %v4996_v9, 0  ;;  %v1887_v22 = vsel %vm1641_vm2, %v1885_v30, %v4996_v9 }
 0x800   : > { %v1895_v11 = vsel %vm1538_vm1, %v1887_v22, 0 }
 0x86c   : > { %v1785_v7 = vpop.xlane.xlu0 %1784 }
 0x86d   : > { %4305 = vrcp.f32 %v1785_v7 }
 0x870   : > { %v1788_v8 = vpop.xlane.xlu0 %1787 }
 0x871   : > { %v1791_v10 = vpop.xlane.xlu1 %1790  ;;  %4307 = vrcp.f32 %v1788_v8 }
 0x872   : > { %4309 = vrcp.f32 %v1791_v10 }
 0x874   : > { %v1805_v48 = vpop.permute.xlu0 %1804 }
 0x875   : > { %v1814_v14 = vsel %vm1641_vm2, %v1805_v48, 0  ;;  %4066 = vmatprep.subr.msk.bf16.mxu1 %vm1641_vm2, %v1805_v48  ;;  %v1803_v16 = vpop.permute.xlu1 %1802 }
 0x876   : > { %3978 = vmatpush3.bf16.msra.mxu1 %v1814_v14 }
 0x877   : > { %3979 = vmatprep.subr.bf16.mxu1 %v1803_v16 }
 0x87a   : > { %3980 = vmatpush3.bf16.msra.mxu1 %v1803_v16  ;;  %v4306_v29 = vpop.eup %4305 }
 0x87b   : > { %4067 = vmatprep.subr.msk.bf16.mxu1 %vm1538_vm1, %v4996_v9  ;;  %v1793_v18 = vmul.f32 %v4306_v29, %v4300_v59 }
 0x87e   : > { %v4308_v15 = vpop.eup %4307 }
 0x87f   : > { %v4310_v17 = vpop.eup %4309  ;;  %v1795_v56 = vmul.f32 %v4308_v15, %v4302_v61 }
 0x880   : > { %v1797_v5 = vmul.f32 %v4310_v17, %v4304_v0 }
 0x881   : > { %v1798_v20 = vpack.c.bf16 %v1795_v56, %v1793_v18 }
 0x882   : > { %v1799_v26 = vpack.c.bf16 %v1797_v5, %v1797_v5 }
 0x883   : > { %3981 = vmatprep.mubr.msk.bf16.mxu1 %vm1599_vm3, %v1798_v20 }
 0x884   : > { %3982 = vmatmul.mubr.msk.bf16.vlgmr.msra.gmra.mxu1 %vm1599_vm3, %v1799_v26 }
 0x885   : > { %3986 = vmatpush3.bf16.xpose.msra.mxu1 %v1898_v32  ;;  %3989 = vmatprep.mubr.msk.bf16.mxu1 %vm1538_vm1, %v1883_v36 }
 0x886   : > { %4068 = vmatprep.subr.msk.bf16.mxu1 %vm1538_vm1, %v1887_v22 }
 0x88d   : > { %3988 = vmatpush3.bf16.xpose.msra.mxu1 %v1895_v11 }
 0x894   : > { %3990 = vmatmul.mubr.msk.bf16.vlgmr.msra.gmra.mxu1 %vm1538_vm1, %v1882_v12 }
 0x944   : > { %v5016_v1 = vpop.f32.mrf.mxu1 }
 0x946   : > { %v5018_v24 = vpop.f32.mrf.mxu1 }
 0x948   : > { %v3984_v27 = vpop.f32.mrf.mxu1 }
 0x94a   : > { %v5020_v38 = vpop.f32.mrf.mxu1 }
 0x94b   : > { %v4140_v39 = vpack.i.bf16 %v5020_v38, %v5018_v24 }
 0x954   : > { %v3991_v40 = vpop.f32.mrf.mxu1 }
 0x955   : > { %v1943_v47 = vadd.f32 %v3991_v40, %v4928_v31 }
 0x956   : > { %v1934_v41 = vpop.f32.mrf.mxu1 }
 0x957   : > { %v1935_v42 = vadd.f32 %v4928_v31, %v1934_v41  ;;  %v1954_v50 = vsel %vm1599_vm3, %v1943_v47, -inf }
 0x958   : > { %v3992_v43 = vpop.f32.mrf.mxu1 }
 0x959   : > { %v1948_v44 = vsel %vm1599_vm3, %v1935_v42, -inf }
 0x95a   : > { %v1937_v45 = vpop.f32.mrf.mxu1  ;;  %1949 = vmax.xlane.f32.xlu1 %v1948_v44 }
 0x95b   : > { %v1938_v46 = vadd.f32 %v4928_v31, %v1937_v45 }
 0x95d   : > { %v1951_v49 = vsel %vm1599_vm3, %v1938_v46, -inf }
 0x95e   : > { %1952 = vmax.xlane.f32.xlu0 %v1951_v49 }
 0x962   : > { %1955 = vmax.xlane.f32.xlu0 %v1954_v50 }
 0x9e3   : > { %v1950_v52 = vpop.xlane.xlu1 %1949 }
 0x9e4   : > { %v1957_v53 = vsub.f32 %v1935_v42, %v1950_v52 }
 0x9e6   : > { %v1960_v54 = vmul.f32 1.442695, %v1957_v53 }
 0x9e7   : > { %v1953_v55 = vpop.xlane.xlu0 %1952 }
 0x9e8   : > { %4311 = vpow2.f32 %v1960_v54  ;;  %v1958_v57 = vsub.f32 %v1938_v46, %v1953_v55 }
 0x9ea   : > { %v1962_v58 = vmul.f32 1.442695, %v1958_v57 }
 0x9eb   : > { %v1956_v59 = vpop.xlane.xlu0 %1955 }
 0x9ec   : > { %4313 = vpow2.f32 %v1962_v58  ;;  %v1959_v60 = vsub.f32 %v1943_v47, %v1956_v59 }
 0x9ee   : > { %v1964_v61 = vmul.f32 1.442695, %v1959_v60 }
 0x9f0   : > { %4315 = vpow2.f32 %v1964_v61 }
 0x9f5   : > { %v4312_v0 = vpop.eup %4311 }
 0x9f6   : > { %v1966_v3 = vsel %vm1599_vm3, %v4312_v0, 0.0 }
 0x9f7   : > { %1967 = vadd.xlane.f32.xlu1 %v1966_v3 }
 0x9f9   : > { %v4314_v6 = vpop.eup %4313 }
 0x9fa   : > { %v1969_v7 = vsel %vm1599_vm3, %v4314_v6, 0.0 }
 0x9fb   : > { %1970 = vadd.xlane.f32.xlu0 %v1969_v7 }
 0x9fd   : > { %v4316_v8 = vpop.eup %4315 }
 0x9fe   : > { %v1972_v2 = vsel %vm1599_vm3, %v4316_v8, 0.0 }
 0x9ff   : > { %1973 = vadd.xlane.f32.xlu1 %v1972_v2 }
 0xa10   : > { %2049 = vrot.lane.b32.xlu1 %v1887_v22, %s4476_s22 }
 0xa11   : > { %2051 = vrot.lane.b32.xlu0 %v4996_v9, %s4476_s22 }
 0xa14   : > { %2045 = vrot.lane.b32.xlu1 %v1883_v36, %s4476_s22 }
 0xa18   : > { %2047 = vrot.lane.b32.xlu1 %v1882_v12, %s4476_s22 }
 0xa80   : > { %v1968_v10 = vpop.xlane.xlu1 %1967 }
 0xa81   : > { %4317 = vrcp.f32 %v1968_v10 }
 0xa84   : > { %v1971_v4 = vpop.xlane.xlu0 %1970 }
 0xa85   : > { %4319 = vrcp.f32 %v1971_v4 }
 0xa88   : > { %v2052_v48 = vpop.permute.xlu0 %2051  ;;  %v1974_v13 = vpop.xlane.xlu1 %1973 }
 0xa89   : > { %4321 = vrcp.f32 %v1974_v13  ;;  %4070 = vmatprep.subr.msk.bf16.mxu0 %vm1538_vm1, %v2052_v48  ;;  %v2063_v5 = vsel %vm1538_vm1, %v2052_v48, 0 }
 0xa8c   : > { %v2050_v17 = vpop.permute.xlu1 %2049 }
 0xa8d   : > { %v2060_v21 = vsel %vm1538_vm1, %v2050_v17, 0 }
 0xa8e   : > { %v4318_v14 = vpop.eup %4317 }
 0xa8f   : > { %v1976_v29 = vmul.f32 %v4318_v14, %v4312_v0 }
 0xa90   : > { %v2046_v20 = vpop.permute.xlu1 %2045 }
 0xa92   : > { %v4320_v16 = vpop.eup %4319 }
 0xa93   : > { %v1978_v15 = vmul.f32 %v4320_v16, %v4314_v6  ;;  %v4187_v16 = vld [vmem:[%s4610_s1 + $0x38] sm:$0xff]  }
 0xa94   : > { %v2048_v26 = vpop.permute.xlu1 %2047 }
 0xa95   : > { %v1981_v18 = vpack.c.bf16 %v1978_v15, %v1976_v29  ;;  %v4188_v15 = vld [vmem:[%s4610_s1 + $0x30] sm:$0xff]  }
 0xa96   : > { %v4322_v9 = vpop.eup %4321 }
 0xa97   : > { %3997 = vmatprep.mubr.msk.bf16.mxu0 %vm1599_vm3, %v1981_v18  ;;  %v1980_v56 = vmul.f32 %v4322_v9, %v4316_v8  ;;  %v4190_v18 = vld [vmem:[%s4610_s1 + $0x20] sm:$0xff]   ;;  %v4191_v9 = vld [vmem:[%s4610_s1 + $0x18] sm:$0xff]  }
 0xa99   : > { %v1982_v12 = vpack.c.bf16 %v1980_v56, %v1980_v56  ;;  %v4192_v56 = vld [vmem:[%s4610_s1 + $0x10] sm:$0xff]  }
 0xa9b   : > { %3998 = vmatmul.mubr.msk.bf16.vlgmr.msra.gmra.mxu0 %vm1599_vm3, %v1982_v12 }
 0xa9c   : > { %4002 = vmatpush3.bf16.xpose.msra.mxu0 %v2063_v5  ;;  %4005 = vmatprep.mubr.msk.bf16.mxu0 %vm1538_vm1, %v2046_v20  ;;  %v4193_v5 = vld [vmem:[%s4610_s1 + $0x8] sm:$0xff]  }
 0xa9d   : > { %4071 = vmatprep.subr.msk.bf16.mxu0 %vm1538_vm1, %v2050_v17  ;;  %v4189_v17 = vld [vmem:[%s4610_s1 + $0x28] sm:$0xff]  }
 0xaa4   : > { %4004 = vmatpush3.bf16.xpose.msra.mxu0 %v2060_v21 }
 0xaab   : > { %4006 = vmatmul.mubr.msk.bf16.vlgmr.msra.gmra.mxu0 %vm1538_vm1, %v2048_v26  ;;  %v4194_v26 = vld [vmem:[%s4610_s1] sm:$0xff]  }
 0xaac   : > { %2703 = vmatprep.mubr.bf16.mxu0 %v4474_v37 }
 0xb5b   : > { %v5047_v30 = vpop.f32.mrf.mxu0 }
 0xb5d   : > { %v5049_v32 = vpop.f32.mrf.mxu0 }
 0xb5f   : > { %v4000_v36 = vpop.f32.mrf.mxu0 }
 0xb61   : > { %v5051_v22 = vpop.f32.mrf.mxu0 }
 0xb6b   : > { %v4007_v11 = vpop.f32.mrf.mxu0 }
 0xb6c   : > { %v2108_v42 = vadd.f32 %v4007_v11, %v4928_v31 }
 0xb6d   : > { %v2099_v27 = vpop.f32.mrf.mxu0 }
 0xb6e   : > { %v2100_v40 = vadd.f32 %v4928_v31, %v2099_v27  ;;  %v2119_v47 = vsel %vm1599_vm3, %v2108_v42, -inf }
 0xb6f   : > { %v4008_v41 = vpop.f32.mrf.mxu0 }
 0xb70   : > { %v2113_v43 = vsel %vm1599_vm3, %v2100_v40, -inf }
 0xb71   : > { %v2102_v44 = vpop.f32.mrf.mxu0  ;;  %2114 = vmax.xlane.f32.xlu0 %v2113_v43 }
 0xb72   : > { %v2103_v45 = vadd.f32 %v4928_v31, %v2102_v44 }
 0xb74   : > { %v2116_v46 = vsel %vm1599_vm3, %v2103_v45, -inf }
 0xb75   : > { %2117 = vmax.xlane.f32.xlu1 %v2116_v46  ;;  %2120 = vmax.xlane.f32.xlu0 %v2119_v47 }
 0xbfa   : > { %v2115_v49 = vpop.xlane.xlu0 %2114 }
 0xbfb   : > { %v2122_v50 = vsub.f32 %v2100_v40, %v2115_v49 }
 0xbfd   : > { %v2125_v52 = vmul.f32 1.442695, %v2122_v50 }
 0xbfe   : > { %v2118_v53 = vpop.xlane.xlu1 %2117  ;;  %v2121_v54 = vpop.xlane.xlu0 %2120 }
 0xbff   : > { %4323 = vpow2.f32 %v2125_v52  ;;  %v2123_v55 = vsub.f32 %v2103_v45, %v2118_v53  ;;  %v2124_v57 = vsub.f32 %v2108_v42, %v2121_v54  ;;  %v4444_v54 = vld [vmem:[%s5486_s26 + $0x8] sm:$0xff] }
 0xc01   : > { %v2127_v58 = vmul.f32 1.442695, %v2123_v55  ;;  %v2129_v59 = vmul.f32 1.442695, %v2124_v57 }
 0xc03   : > { %4325 = vpow2.f32 %v2127_v58 }
 0xc04   : > { %4327 = vpow2.f32 %v2129_v59 }
 0xc0c   : > { %v4324_v60 = vpop.eup %4323 }
 0xc0d   : > { %v2131_v31 = vsel %vm1599_vm3, %v4324_v60, 0.0 }
 0xc0e   : > { %2132 = vadd.xlane.f32.xlu0 %v2131_v31 }
 0xc10   : > { %v4326_v61 = vpop.eup %4325 }
 0xc11   : > { %v4328_v0 = vpop.eup %4327  ;;  %v2134_v3 = vsel %vm1599_vm3, %v4326_v61, 0.0 }
 0xc12   : > { %2135 = vadd.xlane.f32.xlu0 %v2134_v3  ;;  %v2137_v6 = vsel %vm1599_vm3, %v4328_v0, 0.0 }
 0xc13   : > { %2138 = vadd.xlane.f32.xlu1 %v2137_v6 }
 0xc24   : > { %2148 = vrot.lane.b32.xlu1 %v4967_v23, %s4476_s22 }
 0xc28   : > { %4141 = vrot.lane.b32.xlu1 %v4140_v39, %s4476_s22  ;;  %2150 = vrot.lane.b32.xlu0 %v4956_v19, %s4476_s22 }
 0xc97   : > { %v2133_v7 = vpop.xlane.xlu0 %2132 }
 0xc98   : > { %4329 = vrcp.f32 %v2133_v7 }
 0xc9b   : > { %v2136_v8 = vpop.xlane.xlu0 %2135 }
 0xc9c   : > { %v2139_v2 = vpop.xlane.xlu1 %2138  ;;  %4331 = vrcp.f32 %v2136_v8 }
 0xc9d   : > { %4333 = vrcp.f32 %v2139_v2 }
 0xc9f   : > { %v2151_v10 = vpop.permute.xlu0 %2150 }
 0xca0   : > { %v2160_v4 = vsel %vm1641_vm2, %v2151_v10, 0  ;;  %4072 = vmatprep.subr.msk.bf16.mxu1 %vm1641_vm2, %v2151_v10  ;;  %v2149_v23 = vpop.permute.xlu1 %2148 }
 0xca1   : > { %4010 = vmatpush3.bf16.msra.mxu1 %v2160_v4  ;;  %v4445_v4 = vld [vmem:[%s5486_s26 + $0x10] sm:$0xff] }
 0xca2   : > { %4011 = vmatprep.subr.bf16.mxu1 %v2149_v23 }
 0xca4   : > { %v4142_v12 = vpop.permute.xlu1 %4141 }
 0xca5   : > { %4012 = vmatpush3.bf16.msra.mxu1 %v2149_v23  ;;  %v4330_v19 = vpop.eup %4329  ;;  %v4144_v20 = vunpack.i.h.bf16 %v4142_v12  ;;  %v4143_v21 = vunpack.i.l.bf16 %v4142_v12 }
 0xca6   : > { %4017 = vmatprep.subr.bf16.mxu1 %v4473_v62  ;;  %v2141_v39 = vmul.f32 %v4330_v19, %v4324_v60 }
 0xca7   : > { %v1877_v36 = vsel %vm1538_vm1, %v4975_v35, %v4144_v20  ;;  %v1876_v11 = vsel %vm1538_vm1, %v4973_v28, %v4143_v21  ;;  %v3662_v28 = vld [vmem:[%s5492_s7] ss:$0 sm:$0xff]  ;;  %v4448_v20 = vld [vmem:[%s5486_s26 + $0x28] sm:$0xff] }
 0xca8   : > { %v2225_v27 = vpack.c.bf16 %v1877_v36, %v1876_v11  ;;  %v4197_v11 = vld [vmem:[%s4638_s8 + $0xe4] ss:$16 sps:$4 sm:$0xff]  }
 0xca9   : > { %v4332_v24 = vpop.eup %4331  ;;  %2671 = vmatprep.subr.bf16.mxu0 %v4197_v11 }
 0xcaa   : > { %v4334_v38 = vpop.eup %4333  ;;  %v2143_v48 = vmul.f32 %v4332_v24, %v4326_v61 }
 0xcab   : > { %v2145_v13 = vmul.f32 %v4334_v38, %v4328_v0  ;;  %v4446_v38 = vld [vmem:[%s5486_s26 + $0x18] sm:$0xff] }
 0xcac   : > { %v2146_v14 = vpack.c.bf16 %v2143_v48, %v2141_v39 }
 0xcad   : > { %v2147_v29 = vpack.c.bf16 %v2145_v13, %v2145_v13 }
 0xcae   : > { %4013 = vmatprep.mubr.msk.bf16.mxu1 %vm1599_vm3, %v2146_v14 }
 0xcaf   : > { %4014 = vmatmul.mubr.msk.bf16.vlgmr.msra.gmra.mxu1 %vm1599_vm3, %v2147_v29 }
 0xcb0   : > { %4018 = vmatpush3.bf16.msra.mxu1 %v4187_v16  ;;  %4033 = vmatprep.mubr.msk.bf16.mxu1 %vm4475_vm0, %v4473_v62 }
 0xcb1   : > { %4019 = vmatprep.subr.bf16.mxu1 %v4473_v62 }
 0xcb4   : > { %4020 = vmatpush3.bf16.msra.mxu1 %v4188_v15 }
 0xcb5   : > { %4021 = vmatprep.subr.bf16.mxu1 %v4473_v62 }
 0xcb8   : > { %4022 = vmatpush3.bf16.msra.mxu1 %v4189_v17  ;;  %v4447_v17 = vld [vmem:[%s5486_s26 + $0x20] sm:$0xff] }
 0xcb9   : > { %4023 = vmatprep.subr.bf16.mxu1 %v4473_v62 }
 0xcbc   : > { %4024 = vmatpush3.bf16.msra.mxu1 %v4190_v18 }
 0xcbd   : > { %4025 = vmatprep.subr.bf16.mxu1 %v4473_v62 }
 0xcc0   : > { %4026 = vmatpush3.bf16.msra.mxu1 %v4191_v9 }
 0xcc1   : > { %4027 = vmatprep.subr.bf16.mxu1 %v4473_v62 }
 0xcc4   : > { %4028 = vmatpush3.bf16.msra.mxu1 %v4192_v56 }
 0xcc5   : > { %4029 = vmatprep.subr.bf16.mxu1 %v4473_v62 }
 0xcc8   : > { %4030 = vmatpush3.bf16.msra.mxu1 %v4193_v5 }
 0xcc9   : > { %4031 = vmatprep.subr.bf16.mxu1 %v4473_v62 }
 0xccc   : > { %4032 = vmatpush3.bf16.msra.mxu1 %v4194_v26 }
 0xccf   : > { %4034 = vmatmul.mubr.bf16.vlgmr.msra.gmra.mxu1 %v2225_v27  ;;  %v4200_v27 = vld [vmem:[%s4638_s8 + $0xec] ss:$16 sps:$4 sm:$0xff]  }
 0xcd0   : > { %4037 = vmatprep.mubr.msk.bf16.mxu1 %vm4475_vm0, %v4473_v62  ;;  %2734 = vmatprep.subr.bf16.mxu1 %v4200_v27 }
 0xd6f   : > { %v4015_v40 = vpop.f32.mrf.mxu1 }
 0xd71   : > { %v2196_v41 = vpop.f32.mrf.mxu1 }
 0xd72   : > { %v4145_v42 = vpack.i.bf16 %v2196_v41, %v5016_v1  ;;  %v4443_v1 = vld [vmem:[%s5486_s26] sm:$0xff]  ;;  %v4198_v41 = vld [vmem:[%s4638_s8 + $0xe8] ss:$16 sps:$4 sm:$0xff]  }
 0xd73   : > { %v4016_v43 = vpop.f32.mrf.mxu1  ;;  %2735 = vmatpush1.bf16.msra.mxu1 %v4198_v41 }
 0xd74   : > { %4146 = vrot.lane.b32.xlu1 %v4145_v42, %s4476_s22  ;;  %v4203_v42 = vld [vmem:[%s4638_s8 + $0xc4] ss:$16 sps:$4 sm:$0xff]   ;;  %v4206_v43 = vld [vmem:[%s4638_s8 + $0xcc] ss:$16 sps:$4 sm:$0xff]  }
 0xd75   : > { %v2199_v44 = vpop.f32.mrf.mxu1  ;;  %2736 = vmatprep.subr.bf16.mxu1 %v4206_v43  ;;  %v5221_v43 = vld [vmem:[%s5493_s30] ss:$0 sm:$0xff] }
 0xd76   : > { %v4150_v45 = vpack.i.bf16 %v4015_v40, %v2199_v44  ;;  %v4195_v40 = vld [vmem:[%s4638_s8 + $0xe0] ss:$16 sps:$4 sm:$0xff]  }
 0xd77   : > { %2672 = vmatpush1.bf16.msra.mxu0 %v4195_v40  ;;  %v4201_v44 = vld [vmem:[%s4638_s8 + $0xc0] ss:$16 sps:$4 sm:$0xff]  }
 0xd78   : > { %4151 = vrot.lane.b32.xlu0 %v4150_v45, %s4476_s22  ;;  %v4204_v45 = vld [vmem:[%s4638_s8 + $0xc8] ss:$16 sps:$4 sm:$0xff]   ;;  %2673 = vmatprep.subr.bf16.mxu0 %v4203_v42 }
 0xd79   : > { %2737 = vmatpush1.bf16.msra.mxu1 %v4204_v45 }
 0xd7b   : > { %2674 = vmatpush1.bf16.msra.mxu0 %v4201_v44 }
 0xd8f   : > { %v2333_v35 = vpop.f32.mrf.mxu1 }
 0xd90   : > { %v2334_v47 = vadd.f32 %v3662_v28, %v2333_v35  ;;  %v4212_v35 = vld [vmem:[%s4638_s8 + $0xac] ss:$16 sps:$4 sm:$0xff]  }
 0xd91   : > { %v4035_v46 = vpop.f32.mrf.mxu1  ;;  %2738 = vmatprep.subr.bf16.mxu1 %v4212_v35  ;;  %v5230_v35 = vld [vmem:[%s5494_s18] ss:$0 sm:$0xff] }
 0xd92   : > { %v5109_v53 = vadd.f32 %v4443_v1, %v2334_v47  ;;  %v4207_v46 = vld [vmem:[%s4638_s8 + $0xa0] ss:$16 sps:$4 sm:$0xff]   ;;  %v4210_v47 = vld [vmem:[%s4638_s8 + $0xa8] ss:$16 sps:$4 sm:$0xff]   ;;  %v4218_v1 = vld [vmem:[%s4638_s8 + $0x8c] ss:$16 sps:$4 sm:$0xff]  }
 0xd93   : > { %v2336_v49 = vpop.f32.mrf.mxu1  ;;  %2739 = vmatpush1.bf16.msra.mxu1 %v4210_v47 }
 0xd94   : > { %v2337_v50 = vadd.f32 %v3662_v28, %v2336_v49  ;;  %v4213_v49 = vld [vmem:[%s4638_s8 + $0x80] ss:$16 sps:$4 sm:$0xff]   ;;  %2740 = vmatprep.subr.bf16.mxu1 %v4218_v1  ;;  %v4246_v1 = vld [vmem:[%s4649_s5 + $0xb8] sm:$0xff]  }
 0xd95   : > { %v4036_v52 = vpop.f32.mrf.mxu1 }
 0xd96   : > { %v5114_v55 = vadd.f32 %v4444_v54, %v2337_v50  ;;  %v4215_v50 = vld [vmem:[%s4638_s8 + $0x84] ss:$16 sps:$4 sm:$0xff]   ;;  %v4216_v52 = vld [vmem:[%s4638_s8 + $0x88] ss:$16 sps:$4 sm:$0xff]  }
 0xd97   : > { %v4221_v54 = vld [vmem:[%s4638_s8 + $0x64] ss:$16 sps:$4 sm:$0xff]   ;;  %2741 = vmatpush1.bf16.msra.mxu1 %v4216_v52  ;;  %v4245_v52 = vld [vmem:[%s4649_s5 + $0x38] sm:$0xff]  }
 0xd98   : > { %2366 = vadd.xlane.f32.xlu0 %v5114_v55  ;;  %2364 = vadd.xlane.f32.xlu1 %v5109_v53 }
 0xde6   : > { %v4147_v57 = vpop.permute.xlu1 %4146 }
 0xde7   : > { %v4149_v58 = vunpack.i.h.bf16 %v4147_v57  ;;  %v4148_v59 = vunpack.i.l.bf16 %v4147_v57  ;;  %v4224_v57 = vld [vmem:[%s4638_s8 + $0x6c] ss:$16 sps:$4 sm:$0xff]  }
 0xde8   : > { %2742 = vmatprep.subr.bf16.mxu1 %v4224_v57  ;;  %v4248_v57 = vld [vmem:[%s4649_s5 + $0xf0] sm:$0xff]  }
 0xde9   : > { %v1878_v60 = vsel %vm1538_vm1, %v4971_v25, %v4148_v59  ;;  %v2222_v31 = vsel %vm1538_vm1, %v5049_v32, %v4149_v58  ;;  %v4219_v58 = vld [vmem:[%s4638_s8 + $0x60] ss:$16 sps:$4 sm:$0xff]   ;;  %v4222_v59 = vld [vmem:[%s4638_s8 + $0x68] ss:$16 sps:$4 sm:$0xff]  }
 0xdea   : > { %v4152_v61 = vpop.permute.xlu0 %4151  ;;  %v2226_v0 = vpack.c.bf16 %v2222_v31, %v1878_v60  ;;  %v4227_v60 = vld [vmem:[%s4638_s8 + $0x44] ss:$16 sps:$4 sm:$0xff]   ;;  %v4230_v31 = vld [vmem:[%s4638_s8 + $0x4c] ss:$16 sps:$4 sm:$0xff]   ;;  %2743 = vmatpush1.bf16.msra.mxu1 %v4222_v59 }
 0xdeb   : > { %v4154_v3 = vunpack.i.h.bf16 %v4152_v61  ;;  %v4153_v6 = vunpack.i.l.bf16 %v4152_v61  ;;  %v4225_v61 = vld [vmem:[%s4638_s8 + $0x40] ss:$16 sps:$4 sm:$0xff]   ;;  %2744 = vmatprep.subr.bf16.mxu1 %v4230_v31  ;;  %v4252_v31 = vld [vmem:[%s4649_s5 + $0xe8] sm:$0xff]  }
 0xdec   : > { %4038 = vmatmul.mubr.bf16.gmra.mxu1 %v2226_v0  ;;  %v4228_v0 = vld [vmem:[%s4638_s8 + $0x48] ss:$16 sps:$4 sm:$0xff]   ;;  %v4250_v59 = vld [vmem:[%s4649_s5 + $0xb0] sm:$0xff]  }
 0xded   : > { %4041 = vmatprep.mubr.msk.bf16.mxu1 %vm4475_vm0, %v4473_v62  ;;  %v2223_v7 = vsel %vm1538_vm1, %v5051_v22, %v4153_v6  ;;  %v2224_v8 = vsel %vm1538_vm1, %v5047_v30, %v4154_v3  ;;  %v4233_v3 = vld [vmem:[%s4638_s8 + $0x24] ss:$16 sps:$4 sm:$0xff]   ;;  %v4236_v6 = vld [vmem:[%s4638_s8 + $0x2c] ss:$16 sps:$4 sm:$0xff]  }
 0xdee   : > { %v2227_v2 = vpack.c.bf16 %v2224_v8, %v2223_v7  ;;  %2745 = vmatpush1.bf16.msra.mxu1 %v4228_v0  ;;  %v4231_v7 = vld [vmem:[%s4638_s8 + $0x20] ss:$16 sps:$4 sm:$0xff]   ;;  %v4234_v8 = vld [vmem:[%s4638_s8 + $0x28] ss:$16 sps:$4 sm:$0xff]  }
 0xdef   : > { %2746 = vmatprep.subr.bf16.mxu1 %v4236_v6  ;;  %v4254_v0 = vld [vmem:[%s4649_s5 + $0xa8] sm:$0xff]   ;;  %v4256_v6 = vld [vmem:[%s4649_s5 + $0xe0] sm:$0xff]  }
 0xdf2   : > { %2747 = vmatpush1.bf16.msra.mxu1 %v4234_v8  ;;  %v4258_v8 = vld [vmem:[%s4649_s5 + $0xa0] sm:$0xff]  }
 0xdf4   : > { %4042 = vmatmul.mubr.bf16.gmra.mxu1 %v2227_v2  ;;  %v4239_v2 = vld [vmem:[%s4638_s8 + $0x4] ss:$16 sps:$4 sm:$0xff]  }
 0xdf5   : > { %2766 = vmatprep.mubr.bf16.mxu1 %v4474_v37 }
 0xe21   : > { %v2365_v62 = vpop.xlane.xlu1 %2364  ;;  %v2367_v48 = vpop.xlane.xlu0 %2366 }
 0xe22   : > { %v2376_v30 = vmul.f32 0.0078125, %v2365_v62  ;;  %v2377_v29 = vmul.f32 0.0078125, %v2367_v48 }
 0xe24   : > { %v5142_v15 = vsub.f32 %v5109_v53, %v2376_v30  ;;  %v5151_v5 = vsub.f32 %v5114_v55, %v2377_v29 }
 0xe26   : > { %v2388_v26 = vmul.f32 %v5142_v15, %v5142_v15  ;;  %v2389_v36 = vmul.f32 %v5151_v5, %v5151_v5 }
 0xeac   : > { %v2341_v25 = vpop.f32.mrf.mxu1 }
 0xead   : > { %v2342_v32 = vadd.f32 %v3662_v28, %v2341_v25  ;;  %v4242_v25 = vld [vmem:[%s4638_s8 + $0xc] ss:$16 sps:$4 sm:$0xff]  }
 0xeae   : > { %v4039_v10 = vpop.f32.mrf.mxu1  ;;  %2748 = vmatprep.subr.bf16.mxu1 %v4242_v25  ;;  %v4260_v25 = vld [vmem:[%s4649_s5 + $0xd8] sm:$0xff]  }
 0xeaf   : > { %v5132_v23 = vadd.f32 %v4445_v4, %v2342_v32  ;;  %v4237_v32 = vld [vmem:[%s4638_s8] ss:$16 sps:$4 sm:$0xff]   ;;  %v4240_v10 = vld [vmem:[%s4638_s8 + $0x8] ss:$16 sps:$4 sm:$0xff]  }
 0xeb0   : > { %v2344_v19 = vpop.f32.mrf.mxu1  ;;  %2749 = vmatpush1.bf16.msra.mxu1 %v4240_v10  ;;  %v4262_v10 = vld [vmem:[%s4649_s5 + $0x98] sm:$0xff]  }
 0xeb1   : > { %v2345_v24 = vadd.f32 %v3662_v28, %v2344_v19  ;;  %2368 = vadd.xlane.f32.xlu0 %v5132_v23 }
 0xeb2   : > { %v4040_v22 = vpop.f32.mrf.mxu1 }
 0xeb3   : > { %v5138_v39 = vadd.f32 %v4446_v38, %v2345_v24 }
 0xeb4   : > { %v2349_v13 = vpop.f32.mrf.mxu1 }
 0xeb5   : > { %v2350_v14 = vadd.f32 %v3662_v28, %v2349_v13  ;;  %2370 = vadd.xlane.f32.xlu0 %v5138_v39 }
 0xeb6   : > { %v4043_v16 = vpop.f32.mrf.mxu1 }
 0xeb7   : > { %v5147_v18 = vadd.f32 %v4447_v17, %v2350_v14 }
 0xeb8   : > { %v2352_v9 = vpop.f32.mrf.mxu1 }
 0xeb9   : > { %v2353_v56 = vadd.f32 %v3662_v28, %v2352_v9  ;;  %2372 = vadd.xlane.f32.xlu1 %v5147_v18  ;;  %v4209_v28 = vld [vmem:[%s4638_s8 + $0xa4] ss:$16 sps:$4 sm:$0xff]  }
 0xeba   : > { %v4044_v12 = vpop.f32.mrf.mxu1  ;;  %2675 = vmatprep.subr.bf16.mxu0 %v4209_v28 }
 0xebb   : > { %v5156_v21 = vadd.f32 %v4448_v20, %v2353_v56  ;;  %2676 = vmatpush1.bf16.msra.mxu0 %v4207_v46 }
 0xebc   : > { %2677 = vmatprep.subr.bf16.mxu0 %v4215_v50  ;;  %v4244_v50 = vld [vmem:[%s4649_s5 + $0xf8] sm:$0xff]  }
 0xebd   : > { %2394 = vadd.xlane.f32.xlu1 %v2388_v26  ;;  %2374 = vadd.xlane.f32.xlu0 %v5156_v21 }
 0xebe   : > { %3891 = vmatprep.subr.bf16.mxu1 %v4244_v50 }
 0xebf   : > { %2678 = vmatpush1.bf16.msra.mxu0 %v4213_v49 }
 0xec0   : > { %2679 = vmatprep.subr.bf16.mxu0 %v4221_v54  ;;  %v4247_v54 = vld [vmem:[%s4649_s5 + $0x70] sm:$0xff]  }
 0xec1   : > { %2396 = vadd.xlane.f32.xlu0 %v2389_v36 }
 0xec3   : > { %2680 = vmatpush1.bf16.msra.mxu0 %v4219_v58  ;;  %v4249_v58 = vld [vmem:[%s4649_s5 + $0x30] sm:$0xff]  }
 0xec4   : > { %2681 = vmatprep.subr.bf16.mxu0 %v4227_v60  ;;  %v4251_v60 = vld [vmem:[%s4649_s5 + $0x68] sm:$0xff]  }
 0xec7   : > { %2682 = vmatpush1.bf16.msra.mxu0 %v4225_v61  ;;  %v4253_v61 = vld [vmem:[%s4649_s5 + $0x28] sm:$0xff]  }
 0xec8   : > { %2683 = vmatprep.subr.bf16.mxu0 %v4233_v3  ;;  %v4255_v3 = vld [vmem:[%s4649_s5 + $0x60] sm:$0xff]  }
 0xecb   : > { %2684 = vmatpush1.bf16.msra.mxu0 %v4231_v7  ;;  %v4257_v7 = vld [vmem:[%s4649_s5 + $0x20] sm:$0xff]  }
 0xecc   : > { %2685 = vmatprep.subr.bf16.mxu0 %v4239_v2  ;;  %v4259_v2 = vld [vmem:[%s4649_s5 + $0x58] sm:$0xff]  }
 0xecf   : > { %2686 = vmatpush1.bf16.msra.mxu0 %v4237_v32  ;;  %v4261_v32 = vld [vmem:[%s4649_s5 + $0x18] sm:$0xff]  }
 0xf3a   : > { %v2369_v4 = vpop.xlane.xlu0 %2368 }
 0xf3b   : > { %v2378_v62 = vmul.f32 0.0078125, %v2369_v4  ;;  %v4263_v4 = vld [vmem:[%s4649_s5 + $0x50] sm:$0xff]  }
 0xf3d   : > { %v5196_v19 = vsub.f32 %v5132_v23, %v2378_v62  ;;  %v4264_v62 = vld [vmem:[%s4649_s5 + $0xd0] sm:$0xff]  }
 0xf3e   : > { %v2371_v24 = vpop.xlane.xlu0 %2370 }
 0xf3f   : > { %v2379_v22 = vmul.f32 0.0078125, %v2371_v24  ;;  %v2390_v30 = vmul.f32 %v5196_v19, %v5196_v19  ;;  %v4265_v24 = vld [vmem:[%s4649_s5 + $0x10] sm:$0xff]  }
 0xf41   : > { %v5201_v38 = vsub.f32 %v5138_v39, %v2379_v22  ;;  %2398 = vadd.xlane.f32.xlu1 %v2390_v30  ;;  %v4266_v22 = vld [vmem:[%s4649_s5 + $0x90] sm:$0xff]  }
 0xf42   : > { %v2373_v48 = vpop.xlane.xlu1 %2372 }
 0xf43   : > { %v2380_v13 = vmul.f32 0.0078125, %v2373_v48  ;;  %v2391_v14 = vmul.f32 %v5201_v38, %v5201_v38 }
 0xf45   : > { %v5206_v16 = vsub.f32 %v5147_v18, %v2380_v13  ;;  %2400 = vadd.xlane.f32.xlu0 %v2391_v14  ;;  %v4267_v13 = vld [vmem:[%s4649_s5 + $0x48] sm:$0xff]  }
 0xf46   : > { %v2395_v29 = vpop.xlane.xlu1 %2394  ;;  %v2375_v17 = vpop.xlane.xlu0 %2374  ;;  %v4268_v14 = vld [vmem:[%s4649_s5 + $0xc8] sm:$0xff]  }
 0xf47   : > { %v2406_v9 = vmul.f32 0.0078125, %v2395_v29  ;;  %v2381_v56 = vmul.f32 0.0078125, %v2375_v17  ;;  %v2392_v12 = vmul.f32 %v5206_v16, %v5206_v16  ;;  %v4269_v17 = vld [vmem:[%s4649_s5 + $0x8] sm:$0xff]  }
 0xf49   : > { %v2412_v20 = vadd.f32 1e-05, %v2406_v9  ;;  %v5211_v26 = vsub.f32 %v5156_v21, %v2381_v56  ;;  %2402 = vadd.xlane.f32.xlu1 %v2392_v12  ;;  %v4270_v9 = vld [vmem:[%s4649_s5 + $0x88] sm:$0xff]  }
 0xf4a   : > { %v2397_v36 = vpop.xlane.xlu0 %2396 }
 0xf4b   : > { %4335 = vrsqrt.f32 %v2412_v20  ;;  %v2407_v11 = vmul.f32 0.0078125, %v2397_v36  ;;  %v2393_v27 = vmul.f32 %v5211_v26, %v5211_v26  ;;  %v4271_v20 = vld [vmem:[%s4649_s5 + $0x40] sm:$0xff]  }
 0xf4c   : > { %v4272_v36 = vld [vmem:[%s4649_s5 + $0xc0] sm:$0xff]  }
 0xf4d   : > { %v2413_v40 = vadd.f32 1e-05, %v2407_v11  ;;  %2404 = vadd.xlane.f32.xlu0 %v2393_v27  ;;  %v4273_v27 = vld [vmem:[%s4649_s5] sm:$0xff]  }
 0xf4f   : > { %4337 = vrsqrt.f32 %v2413_v40  ;;  %v4274_v40 = vld [vmem:[%s4649_s5 + $0x80] sm:$0xff]  }
 0xf58   : > { %v4336_v41 = vpop.eup %4335 }
 0xf59   : > { %v2424_v42 = vmul.f32 %v4336_v41, %v5142_v15 }
 0xf5b   : > { %v2436_v28 = vmul.f32 %v5221_v43, %v2424_v42 }
 0xf5c   : > { %v4338_v44 = vpop.eup %4337 }
 0xf5d   : > { %v2425_v45 = vmul.f32 %v4338_v44, %v5151_v5  ;;  %v2448_v46 = vadd.f32 %v5230_v35, %v2436_v28  ;;  %v4243_v5 = vld [vmem:[%s4649_s5 + $0x78] sm:$0xff]  }
 0xf5e   : > { %3857 = vmatprep.subr.bf16.mxu0 %v4243_v5 }
 0xf5f   : > { %v2437_v15 = vmul.f32 %v5221_v43, %v2425_v45 }
 0xf61   : > { %v2449_v47 = vadd.f32 %v5230_v35, %v2437_v15 }
 0xf63   : > { %v2454_v49 = vpack.c.bf16 %v2449_v47, %v2448_v46 }
 0xf65   : > { %2704 = vmatmul.mubr.bf16.vlgmr.msra.gmra.mxu0 %v2454_v49  ;;  %2767 = vmatmul.mubr.bf16.vlgmr.msra.gmra.mxu1 %v2454_v49 }
 0xf66   : > { %2713 = vmatprep.mubr.bf16.mxu0 %v4474_v37  ;;  %2776 = vmatprep.mubr.bf16.mxu1 %v4474_v37 }
 0xf67   : > { %3858 = vmatpush3.bf16.msra.mxu0 %v4245_v52  ;;  %3892 = vmatpush3.bf16.msra.mxu1 %v4246_v1 }
 0xf68   : > { %3859 = vmatprep.subr.bf16.mxu0 %v4247_v54  ;;  %3893 = vmatprep.subr.bf16.mxu1 %v4248_v57 }
 0xf6b   : > { %3860 = vmatpush3.bf16.msra.mxu0 %v4249_v58  ;;  %3894 = vmatpush3.bf16.msra.mxu1 %v4250_v59 }
 0xf6c   : > { %3861 = vmatprep.subr.bf16.mxu0 %v4251_v60  ;;  %3895 = vmatprep.subr.bf16.mxu1 %v4252_v31 }
 0xf6f   : > { %3862 = vmatpush3.bf16.msra.mxu0 %v4253_v61  ;;  %3896 = vmatpush3.bf16.msra.mxu1 %v4254_v0 }
 0xf70   : > { %3863 = vmatprep.subr.bf16.mxu0 %v4255_v3  ;;  %3897 = vmatprep.subr.bf16.mxu1 %v4256_v6  ;;  %v2505_v6 = vsub.s32 3, %v4861_v33 }
 0xf73   : > { %3864 = vmatpush3.bf16.msra.mxu0 %v4257_v7  ;;  %3898 = vmatpush3.bf16.msra.mxu1 %v4258_v8 }
 0xf74   : > { %3865 = vmatprep.subr.bf16.mxu0 %v4259_v2  ;;  %3899 = vmatprep.subr.bf16.mxu1 %v4260_v25 }
 0xf77   : > { %3866 = vmatpush3.bf16.msra.mxu0 %v4261_v32  ;;  %3900 = vmatpush3.bf16.msra.mxu1 %v4262_v10 }
 0xf78   : > { %3867 = vmatprep.subr.bf16.mxu0 %v4263_v4  ;;  %3901 = vmatprep.subr.bf16.mxu1 %v4264_v62 }
 0xf7b   : > { %3868 = vmatpush3.bf16.msra.mxu0 %v4265_v24  ;;  %3902 = vmatpush3.bf16.msra.mxu1 %v4266_v22 }
 0xf7c   : > { %3869 = vmatprep.subr.bf16.mxu0 %v4267_v13  ;;  %3903 = vmatprep.subr.bf16.mxu1 %v4268_v14 }
 0xf7f   : > { %3870 = vmatpush3.bf16.msra.mxu0 %v4269_v17  ;;  %3904 = vmatpush3.bf16.msra.mxu1 %v4270_v9 }
 0xf80   : > { %3871 = vmatprep.subr.bf16.mxu0 %v4271_v20  ;;  %3905 = vmatprep.subr.bf16.mxu1 %v4272_v36 }
 0xf83   : > { %3872 = vmatpush3.bf16.msra.mxu0 %v4273_v27  ;;  %3906 = vmatpush3.bf16.msra.mxu1 %v4274_v40 }
 0xfca   : > { %v2399_v30 = vpop.xlane.xlu1 %2398 }
 0xfcb   : > { %v2408_v48 = vmul.f32 0.0078125, %v2399_v30 }
 0xfcd   : > { %v2414_v29 = vadd.f32 1e-05, %v2408_v48 }
 0xfce   : > { %v2401_v56 = vpop.xlane.xlu0 %2400 }
 0xfcf   : > { %4339 = vrsqrt.f32 %v2414_v29  ;;  %v2409_v12 = vmul.f32 0.0078125, %v2401_v56 }
 0xfd1   : > { %v2415_v11 = vadd.f32 1e-05, %v2409_v12 }
 0xfd2   : > { %v2403_v41 = vpop.xlane.xlu1 %2402 }
 0xfd3   : > { %4341 = vrsqrt.f32 %v2415_v11  ;;  %v2410_v42 = vmul.f32 0.0078125, %v2403_v41 }
 0xfd5   : > { %v2416_v44 = vadd.f32 1e-05, %v2410_v42 }
 0xfd6   : > { %v2405_v45 = vpop.xlane.xlu0 %2404 }
 0xfd7   : > { %4343 = vrsqrt.f32 %v2416_v44  ;;  %v2411_v28 = vmul.f32 0.0078125, %v2405_v45 }
 0xfd9   : > { %v2417_v15 = vadd.f32 1e-05, %v2411_v28 }
 0xfdb   : > { %4345 = vrsqrt.f32 %v2417_v15 }
 0xfdc   : > { %v4340_v46 = vpop.eup %4339 }
 0xfdd   : > { %v2426_v47 = vmul.f32 %v4340_v46, %v5196_v19 }
 0xfdf   : > { %v2438_v50 = vmul.f32 %v5221_v43, %v2426_v47 }
 0xfe0   : > { %v4342_v49 = vpop.eup %4341 }
 0xfe1   : > { %v2427_v5 = vmul.f32 %v4342_v49, %v5201_v38  ;;  %v2450_v54 = vadd.f32 %v5230_v35, %v2438_v50 }
 0xfe3   : > { %v2439_v52 = vmul.f32 %v5221_v43, %v2427_v5 }
 0xfe4   : > { %v4344_v1 = vpop.eup %4343 }
 0xfe5   : > { %v2451_v57 = vadd.f32 %v5230_v35, %v2439_v52  ;;  %v2428_v58 = vmul.f32 %v4344_v1, %v5206_v16  ;;  %v2489_v16 = vld [vmem:[%s4644_s25] sm:$0xf] }
 0xfe6   : > { %v5291_v7 = vrot.slane %v2489_v16, %v1269_v63 }
 0xfe7   : > { %v2455_v59 = vpack.c.bf16 %v2451_v57, %v2450_v54  ;;  %v2440_v38 = vmul.f32 %v5221_v43, %v2428_v58 }
 0xfe8   : > { %v4346_v60 = vpop.eup %4345 }
 0xfe9   : > { %2714 = vmatmul.mubr.bf16.gmra.mxu0 %v2455_v59  ;;  %2777 = vmatmul.mubr.bf16.gmra.mxu1 %v2455_v59  ;;  %v2429_v19 = vmul.f32 %v4346_v60, %v5211_v26  ;;  %v2452_v61 = vadd.f32 %v5230_v35, %v2440_v38  ;;  %v5287_v26 = vrot.slane %v2489_v16, %v1261_v34 }
 0xfea   : > { %2723 = vmatprep.mubr.bf16.mxu0 %v4474_v37  ;;  %2786 = vmatprep.mubr.bf16.mxu1 %v4474_v37  ;;  %v5295_v37 = vrot.slane %v2489_v16, %v1265_v51 }
 0xfeb   : > { %v2441_v31 = vmul.f32 %v5221_v43, %v2429_v19  ;;  %v5297_v43 = vrot.slane %v2489_v16, %v2505_v6 }
 0xfed   : > { %v2453_v0 = vadd.f32 %v5230_v35, %v2441_v31 }
 0xfef   : > { %v2456_v3 = vpack.c.bf16 %v2453_v0, %v2452_v61 }
 0xff1   : > { %2724 = vmatmul.mubr.bf16.gmra.mxu0 %v2456_v3  ;;  %2787 = vmatmul.mubr.bf16.gmra.mxu1 %v2456_v3 }
0x1025   : > { %v2705_v35 = vpop.f32.mrf.mxu0  ;;  %v2768_v8 = vpop.f32.mrf.mxu1 }
0x1026   : > { %v5300_v2 = vadd.f32 %v2705_v35, %v5287_v26  ;;  %v5303_v25 = vadd.f32 %v2768_v8, %v5291_v7 }
0x1027   : > { %v2707_v34 = vpop.f32.mrf.mxu0  ;;  %v2770_v32 = vpop.f32.mrf.mxu1 }
0x1028   : > { %v3705_v10 = vmul.f32 -1.702, %v5300_v2  ;;  %v3707_v63 = vmul.f32 -1.702, %v5303_v25  ;;  %v5308_v33 = vadd.f32 %v2707_v34, %v5295_v37  ;;  %v5311_v51 = vadd.f32 %v2770_v32, %v5297_v43 }
0x1029   : > { %v2709_v4 = vpop.f32.mrf.mxu0  ;;  %v2772_v62 = vpop.f32.mrf.mxu1 }
0x102a   : > { %v2845_v24 = vmul.f32 1.442695, %v3705_v10  ;;  %v2849_v22 = vmul.f32 1.442695, %v3707_v63  ;;  %v3706_v30 = vmul.f32 -1.702, %v5308_v33  ;;  %v2710_v48 = vadd.f32 %v2709_v4, %v5287_v26 }
0x102b   : > { %v3708_v13 = vmul.f32 -1.702, %v5311_v51  ;;  %v2773_v14 = vadd.f32 %v2772_v62, %v5291_v7  ;;  %v2711_v29 = vpop.f32.mrf.mxu0  ;;  %v2774_v17 = vpop.f32.mrf.mxu1 }
0x102c   : > { %4347 = vpow2.f32 %v2845_v24  ;;  %v2847_v9 = vmul.f32 1.442695, %v3706_v30  ;;  %v3709_v56 = vmul.f32 -1.702, %v2710_v48  ;;  %v2712_v12 = vadd.f32 %v2711_v29, %v5295_v37 }
0x102d   : > { %4349 = vpow2.f32 %v2849_v22  ;;  %v2851_v20 = vmul.f32 1.442695, %v3708_v13  ;;  %v3711_v36 = vmul.f32 -1.702, %v2773_v14  ;;  %v2775_v11 = vadd.f32 %v2774_v17, %v5297_v43 }
0x102e   : > { %4351 = vpow2.f32 %v2847_v9  ;;  %v2853_v27 = vmul.f32 1.442695, %v3709_v56  ;;  %v3710_v40 = vmul.f32 -1.702, %v2712_v12 }
0x102f   : > { %4353 = vpow2.f32 %v2851_v20  ;;  %v2857_v41 = vmul.f32 1.442695, %v3711_v36  ;;  %v3712_v42 = vmul.f32 -1.702, %v2775_v11 }
0x1030   : > { %4355 = vpow2.f32 %v2853_v27  ;;  %v2855_v44 = vmul.f32 1.442695, %v3710_v40 }
0x1031   : > { %4357 = vpow2.f32 %v2857_v41  ;;  %v2859_v45 = vmul.f32 1.442695, %v3712_v42 }
0x1032   : > { %4359 = vpow2.f32 %v2855_v44 }
0x1033   : > { %4361 = vpow2.f32 %v2859_v45 }
0x1039   : > { %v4348_v28 = vpop.eup %4347 }
0x103a   : > { %v4350_v15 = vpop.eup %4349  ;;  %v2893_v46 = vadd.f32 1.0, %v4348_v28 }
0x103b   : > { %v4352_v47 = vpop.eup %4351  ;;  %v2895_v49 = vadd.f32 1.0, %v4350_v15 }
0x103c   : > { %v4354_v5 = vpop.eup %4353  ;;  %4363 = vrcp.f32 %v2893_v46  ;;  %v2894_v50 = vadd.f32 1.0, %v4352_v47 }
0x103d   : > { %v4356_v52 = vpop.eup %4355  ;;  %4365 = vrcp.f32 %v2895_v49  ;;  %v2896_v1 = vadd.f32 1.0, %v4354_v5 }
0x103e   : > { %v4358_v54 = vpop.eup %4357  ;;  %4367 = vrcp.f32 %v2894_v50  ;;  %v2897_v57 = vadd.f32 1.0, %v4356_v52 }
0x103f   : > { %v4360_v58 = vpop.eup %4359  ;;  %4369 = vrcp.f32 %v2896_v1  ;;  %v2899_v59 = vadd.f32 1.0, %v4358_v54 }
0x1040   : > { %v4362_v60 = vpop.eup %4361  ;;  %4371 = vrcp.f32 %v2897_v57  ;;  %v2898_v19 = vadd.f32 1.0, %v4360_v58 }
0x1041   : > { %4373 = vrcp.f32 %v2899_v59  ;;  %v2900_v38 = vadd.f32 1.0, %v4362_v60 }
0x1042   : > { %4375 = vrcp.f32 %v2898_v19 }
0x1043   : > { %4377 = vrcp.f32 %v2900_v38 }
0x1049   : > { %v4364_v31 = vpop.eup %4363 }
0x104a   : > { %v4366_v61 = vpop.eup %4365  ;;  %v2965_v4 = vmul.f32 %v4364_v31, %v5300_v2 }
0x104b   : > { %v4368_v0 = vpop.eup %4367  ;;  %v2967_v22 = vmul.f32 %v4366_v61, %v5303_v25 }
0x104c   : > { %v4370_v3 = vpop.eup %4369  ;;  %v2966_v32 = vmul.f32 %v4368_v0, %v5308_v33 }
0x104d   : > { %v4372_v16 = vpop.eup %4371  ;;  %v2968_v62 = vmul.f32 %v4370_v3, %v5311_v51 }
0x104e   : > { %v4374_v6 = vpop.eup %4373  ;;  %v2969_v8 = vmul.f32 %v4372_v16, %v2710_v48 }
0x104f   : > { %v4376_v35 = vpop.eup %4375  ;;  %v2971_v10 = vmul.f32 %v4374_v6, %v2773_v14 }
0x1050   : > { %v4378_v34 = vpop.eup %4377  ;;  %v2970_v63 = vmul.f32 %v4376_v35, %v2712_v12  ;;  %v2989_v13 = vpack.c.bf16 %v2969_v8, %v2965_v4 }
0x1051   : > { %v2972_v24 = vmul.f32 %v4378_v34, %v2775_v11  ;;  %v2991_v17 = vpack.c.bf16 %v2971_v10, %v2967_v22 }
0x1052   : > { %v2990_v30 = vpack.c.bf16 %v2970_v63, %v2966_v32 }
0x1053   : > { %v2992_v29 = vpack.c.bf16 %v2972_v24, %v2968_v62 }
0x1054   : > { %3296 = vmatprep.mubr.bf16.mxu0 %v2990_v30 }
0x1055   : > { %3353 = vmatprep.mubr.bf16.mxu1 %v2992_v29  ;;  %3297 = vmatmul.mubr.bf16.vlgmr.msra.gmra.mxu0 %v2989_v13 }
0x1056   : > { %3354 = vmatmul.mubr.bf16.vlgmr.msra.gmra.mxu1 %v2991_v17 }
0x10a9   : > { %v2715_v48 = vpop.f32.mrf.mxu0  ;;  %v2778_v9 = vpop.f32.mrf.mxu1 }
0x10aa   : > { %v5324_v33 = vadd.f32 %v2715_v48, %v5287_v26  ;;  %v5327_v2 = vadd.f32 %v2778_v9, %v5291_v7 }
0x10ab   : > { %v2717_v51 = vpop.f32.mrf.mxu0  ;;  %v2780_v14 = vpop.f32.mrf.mxu1 }
0x10ac   : > { %v3713_v25 = vmul.f32 -1.702, %v5324_v33  ;;  %v3715_v56 = vmul.f32 -1.702, %v5327_v2  ;;  %v5332_v12 = vadd.f32 %v2717_v51, %v5295_v37  ;;  %v5335_v20 = vadd.f32 %v2780_v14, %v5297_v43 }
0x10ad   : > { %v2719_v36 = vpop.f32.mrf.mxu0  ;;  %v2782_v11 = vpop.f32.mrf.mxu1 }
0x10ae   : > { %v2861_v27 = vmul.f32 1.442695, %v3713_v25  ;;  %v2865_v40 = vmul.f32 1.442695, %v3715_v56  ;;  %v3714_v41 = vmul.f32 -1.702, %v5332_v12  ;;  %v5339_v42 = vadd.f32 %v2719_v36, %v5287_v26 }
0x10af   : > { %v3716_v44 = vmul.f32 -1.702, %v5335_v20  ;;  %v5343_v45 = vadd.f32 %v2782_v11, %v5291_v7  ;;  %v2721_v28 = vpop.f32.mrf.mxu0  ;;  %v2784_v15 = vpop.f32.mrf.mxu1 }
0x10b0   : > { %4379 = vpow2.f32 %v2861_v27  ;;  %v2863_v46 = vmul.f32 1.442695, %v3714_v41  ;;  %v3717_v47 = vmul.f32 -1.702, %v5339_v42  ;;  %v5347_v49 = vadd.f32 %v2721_v28, %v5295_v37 }
0x10b1   : > { %4381 = vpow2.f32 %v2865_v40  ;;  %v2867_v5 = vmul.f32 1.442695, %v3716_v44  ;;  %v3719_v50 = vmul.f32 -1.702, %v5343_v45  ;;  %v5351_v52 = vadd.f32 %v2784_v15, %v5297_v43  ;;  %v2725_v1 = vpop.f32.mrf.mxu0  ;;  %v2788_v54 = vpop.f32.mrf.mxu1 }
0x10b2   : > { %4383 = vpow2.f32 %v2863_v46  ;;  %v2869_v57 = vmul.f32 1.442695, %v3717_v47  ;;  %v3718_v58 = vmul.f32 -1.702, %v5347_v49  ;;  %v5355_v59 = vadd.f32 %v2725_v1, %v5287_v26 }
0x10b3   : > { %4385 = vpow2.f32 %v2867_v5  ;;  %v2873_v60 = vmul.f32 1.442695, %v3719_v50  ;;  %v3720_v19 = vmul.f32 -1.702, %v5351_v52  ;;  %v5359_v38 = vadd.f32 %v2788_v54, %v5291_v7  ;;  %v2727_v31 = vpop.f32.mrf.mxu0  ;;  %v2790_v61 = vpop.f32.mrf.mxu1 }
0x10b4   : > { %4387 = vpow2.f32 %v2869_v57  ;;  %v2871_v0 = vmul.f32 1.442695, %v3718_v58  ;;  %v3721_v3 = vmul.f32 -1.702, %v5355_v59  ;;  %v5363_v16 = vadd.f32 %v2727_v31, %v5295_v37 }
0x10b5   : > { %4389 = vpow2.f32 %v2873_v60  ;;  %v2875_v6 = vmul.f32 1.442695, %v3720_v19  ;;  %v3723_v35 = vmul.f32 -1.702, %v5359_v38  ;;  %v5367_v8 = vadd.f32 %v2790_v61, %v5297_v43  ;;  %v2729_v34 = vpop.f32.mrf.mxu0  ;;  %v2792_v32 = vpop.f32.mrf.mxu1 }
0x10b6   : > { %4391 = vpow2.f32 %v2871_v0  ;;  %v2877_v10 = vmul.f32 1.442695, %v3721_v3  ;;  %v3722_v63 = vmul.f32 -1.702, %v5363_v16  ;;  %v5371_v4 = vadd.f32 %v2729_v34, %v5287_v26 }
0x10b7   : > { %4393 = vpow2.f32 %v2875_v6  ;;  %v2881_v62 = vmul.f32 1.442695, %v3723_v35  ;;  %v3724_v24 = vmul.f32 -1.702, %v5367_v8  ;;  %v5375_v22 = vadd.f32 %v2792_v32, %v5291_v7  ;;  %v2731_v30 = vpop.f32.mrf.mxu0  ;;  %v2794_v13 = vpop.f32.mrf.mxu1 }
0x10b8   : > { %4395 = vpow2.f32 %v2877_v10  ;;  %v2879_v29 = vmul.f32 1.442695, %v3722_v63  ;;  %v3725_v17 = vmul.f32 -1.702, %v5371_v4  ;;  %v5379_v48 = vadd.f32 %v2731_v30, %v5295_v37 }
0x10b9   : > { %4397 = vpow2.f32 %v2881_v62  ;;  %v2883_v9 = vmul.f32 1.442695, %v3724_v24  ;;  %v3727_v26 = vmul.f32 -1.702, %v5375_v22  ;;  %v5383_v51 = vadd.f32 %v2794_v13, %v5297_v43 }
0x10ba   : > { %4399 = vpow2.f32 %v2879_v29  ;;  %v2885_v14 = vmul.f32 1.442695, %v3725_v17  ;;  %v3726_v7 = vmul.f32 -1.702, %v5379_v48 }
0x10bb   : > { %4401 = vpow2.f32 %v2883_v9  ;;  %v2889_v25 = vmul.f32 1.442695, %v3727_v26  ;;  %v3728_v56 = vmul.f32 -1.702, %v5383_v51 }
0x10bc   : > { %4403 = vpow2.f32 %v2885_v14  ;;  %v2887_v36 = vmul.f32 1.442695, %v3726_v7 }
0x10bd   : > { %v4380_v11 = vpop.eup %4379  ;;  %4405 = vpow2.f32 %v2889_v25  ;;  %v2891_v37 = vmul.f32 1.442695, %v3728_v56 }
0x10be   : > { %v4382_v27 = vpop.eup %4381  ;;  %v2901_v40 = vadd.f32 1.0, %v4380_v11  ;;  %4407 = vpow2.f32 %v2887_v36 }
0x10bf   : > { %v4384_v41 = vpop.eup %4383  ;;  %v2903_v44 = vadd.f32 1.0, %v4382_v27  ;;  %4409 = vpow2.f32 %v2891_v37 }
0x10c0   : > { %v4386_v43 = vpop.eup %4385  ;;  %4411 = vrcp.f32 %v2901_v40  ;;  %v2902_v28 = vadd.f32 1.0, %v4384_v41 }
0x10c1   : > { %v4388_v15 = vpop.eup %4387  ;;  %4413 = vrcp.f32 %v2903_v44  ;;  %v2904_v46 = vadd.f32 1.0, %v4386_v43 }
0x10c2   : > { %v4390_v47 = vpop.eup %4389  ;;  %4415 = vrcp.f32 %v2902_v28  ;;  %v2905_v5 = vadd.f32 1.0, %v4388_v15 }
0x10c3   : > { %v4392_v50 = vpop.eup %4391  ;;  %4417 = vrcp.f32 %v2904_v46  ;;  %v2907_v1 = vadd.f32 1.0, %v4390_v47 }
0x10c4   : > { %v4394_v54 = vpop.eup %4393  ;;  %4419 = vrcp.f32 %v2905_v5  ;;  %v2906_v57 = vadd.f32 1.0, %v4392_v50 }
0x10c5   : > { %v4396_v58 = vpop.eup %4395  ;;  %4421 = vrcp.f32 %v2907_v1  ;;  %v2908_v60 = vadd.f32 1.0, %v4394_v54 }
0x10c6   : > { %v4398_v19 = vpop.eup %4397  ;;  %4423 = vrcp.f32 %v2906_v57  ;;  %v2909_v31 = vadd.f32 1.0, %v4396_v58 }
0x10c7   : > { %v4400_v61 = vpop.eup %4399  ;;  %4425 = vrcp.f32 %v2908_v60  ;;  %v2911_v0 = vadd.f32 1.0, %v4398_v19 }
0x10c8   : > { %v4402_v3 = vpop.eup %4401  ;;  %4427 = vrcp.f32 %v2909_v31  ;;  %v2910_v6 = vadd.f32 1.0, %v4400_v61 }
0x10c9   : > { %v4404_v35 = vpop.eup %4403  ;;  %4429 = vrcp.f32 %v2911_v0  ;;  %v2912_v34 = vadd.f32 1.0, %v4402_v3 }
0x10ca   : > { %v4406_v32 = vpop.eup %4405  ;;  %4431 = vrcp.f32 %v2910_v6  ;;  %v2913_v10 = vadd.f32 1.0, %v4404_v35 }
0x10cb   : > { %v4408_v63 = vpop.eup %4407  ;;  %4433 = vrcp.f32 %v2912_v34  ;;  %v2915_v62 = vadd.f32 1.0, %v4406_v32 }
0x10cc   : > { %v4410_v24 = vpop.eup %4409  ;;  %4435 = vrcp.f32 %v2913_v10  ;;  %v2914_v30 = vadd.f32 1.0, %v4408_v63 }
0x10cd   : > { %v4412_v13 = vpop.eup %4411  ;;  %4437 = vrcp.f32 %v2915_v62  ;;  %v2916_v29 = vadd.f32 1.0, %v4410_v24 }
0x10ce   : > { %v4414_v17 = vpop.eup %4413  ;;  %4439 = vrcp.f32 %v2914_v30  ;;  %v2973_v41 = vmul.f32 %v4412_v13, %v5324_v33 }
0x10cf   : > { %v4416_v9 = vpop.eup %4415  ;;  %4441 = vrcp.f32 %v2916_v29  ;;  %v2975_v15 = vmul.f32 %v4414_v17, %v5327_v2 }
0x10d0   : > { %v4418_v26 = vpop.eup %4417  ;;  %v2974_v11 = vmul.f32 %v4416_v9, %v5332_v12 }
0x10d1   : > { %v4420_v14 = vpop.eup %4419  ;;  %v2976_v44 = vmul.f32 %v4418_v26, %v5335_v20 }
0x10d2   : > { %v4422_v7 = vpop.eup %4421  ;;  %v2977_v56 = vmul.f32 %v4420_v14, %v5339_v42 }
0x10d3   : > { %v4424_v25 = vpop.eup %4423  ;;  %v2979_v37 = vmul.f32 %v4422_v7, %v5343_v45 }
0x10d4   : > { %v4426_v36 = vpop.eup %4425  ;;  %v2978_v27 = vmul.f32 %v4424_v25, %v5347_v49  ;;  %v2993_v5 = vpack.c.bf16 %v2977_v56, %v2973_v41 }
0x10d5   : > { %v4428_v40 = vpop.eup %4427  ;;  %v2980_v43 = vmul.f32 %v4426_v36, %v5351_v52  ;;  %v2995_v12 = vpack.c.bf16 %v2979_v37, %v2975_v15 }
0x10d6   : > { %v4430_v28 = vpop.eup %4429  ;;  %v2994_v46 = vpack.c.bf16 %v2978_v27, %v2974_v11  ;;  %v2981_v57 = vmul.f32 %v4428_v40, %v5355_v59  ;;  %v3729_v59 = vld [vmem:[%s785_s19] ss:$0 sm:$0xff] }
0x10d7   : > { %v4432_v47 = vpop.eup %4431  ;;  %v2996_v42 = vpack.c.bf16 %v2980_v43, %v2976_v44  ;;  %v2983_v19 = vmul.f32 %v4430_v28, %v5359_v38 }
0x10d8   : > { %v4434_v50 = vpop.eup %4433  ;;  %3304 = vmatprep.mubr.bf16.mxu0 %v2994_v46  ;;  %v2982_v52 = vmul.f32 %v4432_v47, %v5363_v16 }
0x10d9   : > { %v4436_v45 = vpop.eup %4435  ;;  %3361 = vmatprep.mubr.bf16.mxu1 %v2996_v42  ;;  %3305 = vmatmul.mubr.bf16.gmra.mxu0 %v2993_v5  ;;  %v2984_v58 = vmul.f32 %v4434_v50, %v5367_v8 }
0x10da   : > { %v4438_v49 = vpop.eup %4437  ;;  %3362 = vmatmul.mubr.bf16.gmra.mxu1 %v2995_v12  ;;  %v2985_v20 = vmul.f32 %v4436_v45, %v5371_v4 }
0x10db   : > { %v4440_v33 = vpop.eup %4439  ;;  %v2987_v2 = vmul.f32 %v4438_v49, %v5375_v22 }
0x10dc   : > { %v4442_v1 = vpop.eup %4441  ;;  %v2986_v54 = vmul.f32 %v4440_v33, %v5379_v48  ;;  %v2997_v0 = vpack.c.bf16 %v2985_v20, %v2981_v57 }
0x10dd   : > { %v2988_v60 = vmul.f32 %v4442_v1, %v5383_v51  ;;  %v2999_v4 = vpack.c.bf16 %v2987_v2, %v2983_v19 }
0x10de   : > { %v2998_v31 = vpack.c.bf16 %v2986_v54, %v2982_v52 }
0x10df   : > { %v3000_v61 = vpack.c.bf16 %v2988_v60, %v2984_v58 }
0x10e0   : > { %3312 = vmatprep.mubr.bf16.mxu0 %v2998_v31 }
0x10e1   : > { %3369 = vmatprep.mubr.bf16.mxu1 %v3000_v61  ;;  %3313 = vmatmul.mubr.bf16.gmra.mxu0 %v2997_v0 }
0x10e2   : > { %3370 = vmatmul.mubr.bf16.gmra.mxu1 %v2999_v4 }
0x1115   : > { %v3873_v16 = vpop.f32.mrf.mxu0 }
0x1116   : > { %v3907_v22 = vpop.f32.mrf.mxu1 }
0x1117   : > { %v3874_v8 = vpop.f32.mrf.mxu0 }
0x1118   : > { %v3875_v48 = vadd.f32 %v3874_v8, %v3873_v16  ;;  %v3908_v51 = vpop.f32.mrf.mxu1 }
0x1119   : > { %v3876_v3 = vpop.f32.mrf.mxu0  ;;  %v3909_v6 = vadd.f32 %v3908_v51, %v3907_v22 }
0x111a   : > { %v3299_v38 = vadd.f32 %v3875_v48, %v3729_v59  ;;  %v3910_v35 = vpop.f32.mrf.mxu1 }
0x111b   : > { %v3877_v34 = vpop.f32.mrf.mxu0 }
0x111c   : > { %v3356_v32 = vadd.f32 %v3909_v6, %v3299_v38  ;;  %v3878_v10 = vadd.f32 %v3877_v34, %v3876_v3  ;;  %v3911_v63 = vpop.f32.mrf.mxu1 }
0x111d   : > { %v3912_v30 = vadd.f32 %v3911_v63, %v3910_v35 }
0x111e   : > { %v3378_v62 = vadd.f32 %v3356_v32, %v5109_v53  ;;  %v3302_v24 = vadd.f32 %v3878_v10, %v3729_v59 }
0x1120   : > { %3384 = vst [vmem:[%s5486_s26] sm:$0xff] %v3378_v62  ;;  %v3359_v13 = vadd.f32 %v3912_v30, %v3302_v24 }
0x1122   : > { %v3379_v29 = vadd.f32 %v3359_v13, %v5114_v55 }
0x1124   : > { %3385 = vst [vmem:[%s5486_s26 + $0x8] sm:$0xff] %v3379_v29 }
0x1199   : > { %v3879_v17 = vpop.f32.mrf.mxu0 }
0x119a   : > { %v3913_v9 = vpop.f32.mrf.mxu1 }
0x119b   : > { %v3880_v26 = vpop.f32.mrf.mxu0 }
0x119c   : > { %v3881_v14 = vadd.f32 %v3880_v26, %v3879_v17  ;;  %v3914_v7 = vpop.f32.mrf.mxu1 }
0x119d   : > { %v3882_v25 = vpop.f32.mrf.mxu0  ;;  %v3915_v56 = vadd.f32 %v3914_v7, %v3913_v9 }
0x119e   : > { %v3307_v53 = vadd.f32 %v3881_v14, %v3729_v59  ;;  %v3916_v36 = vpop.f32.mrf.mxu1 }
0x119f   : > { %v3883_v11 = vpop.f32.mrf.mxu0 }
0x11a0   : > { %v3364_v37 = vadd.f32 %v3915_v56, %v3307_v53  ;;  %v3884_v27 = vadd.f32 %v3883_v11, %v3882_v25  ;;  %v3917_v40 = vpop.f32.mrf.mxu1 }
0x11a1   : > { %v3885_v41 = vpop.f32.mrf.mxu0  ;;  %v3918_v43 = vadd.f32 %v3917_v40, %v3916_v36 }
0x11a2   : > { %v3380_v55 = vadd.f32 %v3364_v37, %v5132_v23  ;;  %v3310_v44 = vadd.f32 %v3884_v27, %v3729_v59  ;;  %v3919_v28 = vpop.f32.mrf.mxu1 }
0x11a3   : > { %v3886_v15 = vpop.f32.mrf.mxu0 }
0x11a4   : > { %3386 = vst [vmem:[%s5486_s26 + $0x10] sm:$0xff] %v3380_v55  ;;  %v3367_v46 = vadd.f32 %v3918_v43, %v3310_v44  ;;  %v3887_v47 = vadd.f32 %v3886_v15, %v3885_v41  ;;  %v3920_v42 = vpop.f32.mrf.mxu1 }
0x11a5   : > { %v3888_v5 = vpop.f32.mrf.mxu0  ;;  %v3921_v45 = vadd.f32 %v3920_v42, %v3919_v28 }
0x11a6   : > { %v3381_v50 = vadd.f32 %v3367_v46, %v5138_v39  ;;  %v3315_v12 = vadd.f32 %v3887_v47, %v3729_v59  ;;  %v3922_v49 = vpop.f32.mrf.mxu1 }
0x11a7   : > { %v3889_v33 = vpop.f32.mrf.mxu0 }
0x11a8   : > { %3387 = vst [vmem:[%s5486_s26 + $0x18] sm:$0xff] %v3381_v50  ;;  %v3372_v23 = vadd.f32 %v3921_v45, %v3315_v12  ;;  %v3890_v20 = vadd.f32 %v3889_v33, %v3888_v5  ;;  %v3923_v1 = vpop.f32.mrf.mxu1 }
0x11a9   : > { %v3924_v54 = vadd.f32 %v3923_v1, %v3922_v49 }
0x11aa   : > { %v3382_v52 = vadd.f32 %v3372_v23, %v5147_v18  ;;  %v3318_v2 = vadd.f32 %v3890_v20, %v3729_v59 }
0x11ac   : > { %3388 = vst [vmem:[%s5486_s26 + $0x20] sm:$0xff] %v3382_v52  ;;  %v3375_v39 = vadd.f32 %v3924_v54, %v3318_v2 }
0x11ae   : > { %v3383_v57 = vadd.f32 %v3375_v39, %v5156_v21 }
0x11b0   : > { %3389 = vst [vmem:[%s5486_s26 + $0x28] sm:$0xff] %v3383_v57 }
0x11b1 PF: > { %s5495_s30 = sld [smem:[#allocation3_spill]] }
0x11b2   : > { %s5496_s27 = sld [smem:[#allocation2_spill]] }
0x11b3   : > { %s5497_s28 = sld [smem:[#allocation4_spill]] }
0x11b7   : > { %s28_s29 = sadd.s32 1, %s5495_s30  }
0x11b8   : > { %p25_p6 = scmp.ge.s32.totalorder %s28_s29, 4  }
0x11ba   :  { %27 = sbr.rel (!%p25_p6) target bundleno = 10 (0xa), region = 162 }

</bundles_post_ra>
